<compile_context>
chip_gen: v7x
topology: tpu7x:2x2x1
jax: 0.10.0
libtpu: 0.0.40
codegen_flags: <defaults>
</compile_context>

<pallas_src>
import functools
import numpy as np
import jax
import jax.numpy as jnp
from jax.experimental import pallas as pl
from jax.experimental.pallas import tpu as pltpu

# ----------------------------- small synthetic config -----------------------------
IMG = (16, 16)        # img_size (H, W)
PATCH = (8, 8)        # patch_size
FRAMES = 4            # num_frames
TUBELET = 2           # tubelet_size
IN_CHANS = 3
EMBED = 128           # embed_dim (divisible by 4 for 3D pos embed, lane aligned)
DEPTH = 2
HEADS = 4
MLP_RATIO = 4.0
NUM_CLASSES = 10
HEAD_PAD = 128        # lane-dense padded classifier width (>= NUM_CLASSES)
USE_CLS_TOKEN = False
LN_EPS = 1e-5

HEAD_DIM = EMBED // HEADS
HIDDEN = int(EMBED * MLP_RATIO)
GH = IMG[0] // PATCH[0]
GW = IMG[1] // PATCH[1]
GT = FRAMES // TUBELET
N_TOKENS = GT * GH * GW
PATCH_DIM = IN_CHANS * TUBELET * PATCH[0] * PATCH[1]
ATTN_SCALE = HEAD_DIM ** (-0.5)
INV_SQRT2 = 0.7071067811865475


# ----------------------------- sincos positional embedding (numpy, exact copy) ----
def _get_1d_sincos_pos_embed_from_grid(embed_dim, pos, scale=None):
    assert embed_dim % 2 == 0
    omega = np.arange(embed_dim // 2, dtype=np.float32)
    omega /= embed_dim / 2.0
    omega = 1.0 / 10000 ** omega
    pos = pos.reshape(-1)
    if scale is not None:
        pos = pos * scale
    out = np.einsum('m,d->md', pos, omega)
    return np.concatenate([np.sin(out), np.cos(out)], axis=1)


def _get_2d_sincos_pos_embed_from_grid(embed_dim, grid):
    assert embed_dim % 2 == 0
    emb_h = _get_1d_sincos_pos_embed_from_grid(embed_dim // 2, grid[0])
    emb_w = _get_1d_sincos_pos_embed_from_grid(embed_dim // 2, grid[1])
    return np.concatenate([emb_h, emb_w], axis=1)


def get_3d_sincos_pos_embed(embed_dim, gh, gw, gt, scale_t=None, use_cls_token=False):
    assert embed_dim % 4 == 0
    embed_dim_spatial = embed_dim // 4 * 3
    embed_dim_temporal = embed_dim // 4
    grid_h = np.arange(gh, dtype=np.float32)
    grid_w = np.arange(gw, dtype=np.float32)
    grid = np.meshgrid(grid_w, grid_h)
    grid = np.stack(grid, axis=0).reshape([2, 1, gh, gw])
    pos_embed_spatial = _get_2d_sincos_pos_embed_from_grid(embed_dim_spatial, grid)
    grid_t = np.arange(gt, dtype=np.float32)
    pos_embed_temporal = _get_1d_sincos_pos_embed_from_grid(embed_dim_temporal, grid_t, scale=scale_t)
    pos_embed_temporal = np.repeat(pos_embed_temporal[:, np.newaxis, :], gh * gw, axis=1)
    pos_embed_spatial = np.repeat(pos_embed_spatial[np.newaxis, :, :], gt, axis=0)
    pos_embed = np.concatenate([pos_embed_temporal, pos_embed_spatial], axis=-1)
    pos_embed = pos_embed.reshape([-1, embed_dim])
    if use_cls_token:
        pos_embed = np.concatenate([np.zeros([1, embed_dim]), pos_embed], axis=0)
    return pos_embed.astype(np.float32)


# ----------------------------- fused Pallas kernel ---------------------------------
def _layernorm(x, g, b):
    # fp32 statistics, biased variance (matches torch LayerNorm)
    mu = jnp.mean(x, axis=-1, keepdims=True)
    var = jnp.mean((x - mu) ** 2, axis=-1, keepdims=True)
    return (x - mu) * jax.lax.rsqrt(var + LN_EPS) * g + b


def fused_vit_kernel(patches_ref, pw_ref, pb_ref, pos_ref,
                     g1_ref, b1_ref, wqkv_ref, bqkv_ref, wproj_ref, bproj_ref,
                     g2_ref, b2_ref, w1_ref, bf1_ref, w2_ref, bf2_ref,
                     fng_ref, fnb_ref, hw_ref, hb_ref,
                     o_ref, x_ref,
                     *, num_heads, head_dim):
    f32 = jnp.float32
    bf16 = jnp.bfloat16
    C = pw_ref.shape[-1]
    n = pos_ref.shape[0]
    d = pl.program_id(1)
    last = pl.num_programs(1) - 1

    # ---- patch embedding (Conv3d with kernel==stride as a matmul) + 3D pos embed ----
    @pl.when(d == 0)
    def _():
        xe = jnp.dot(patches_ref[0], pw_ref[...], preferred_element_type=f32)   # (N, C)
        x_ref[...] = xe + pb_ref[...] + pos_ref[...]

    x = x_ref[...]                                       # (N, C) fp32, persists across depth

    # ---- transformer block d (weights streamed along the depth grid axis) ----
    # --- MHSA branch (pre-LN) ---
    h = _layernorm(x, g1_ref[0], b1_ref[0])
    qkv = jnp.dot(h.astype(bf16), wqkv_ref[0], preferred_element_type=f32) + bqkv_ref[0]
    # attn scale already folded into the q columns of wqkv / bqkv at init time
    q = jnp.transpose(qkv[:, :C].astype(bf16).reshape(n, num_heads, head_dim), (1, 0, 2))
    k = jnp.transpose(qkv[:, C:2 * C].astype(bf16).reshape(n, num_heads, head_dim), (1, 0, 2))
    v = jnp.transpose(qkv[:, 2 * C:].astype(bf16).reshape(n, num_heads, head_dim), (1, 0, 2))
    s = jnp.einsum('hnd,hmd->hnm', q, k, preferred_element_type=f32)      # (H, N, N) fp32
    s = s - jnp.max(s, axis=-1, keepdims=True)
    p = jnp.exp(s)
    p = p * pl.reciprocal(jnp.sum(p, axis=-1, keepdims=True), approx=True)
    oh = jnp.einsum('hnm,hmd->hnd', p.astype(bf16), v, preferred_element_type=f32)
    attn = jnp.transpose(oh, (1, 0, 2)).reshape(n, C)                     # (N, C)
    attn = jnp.dot(attn.astype(bf16), wproj_ref[0], preferred_element_type=f32) + bproj_ref[0]
    x = x + attn                                                          # fp32 residual

    # --- MLP branch (pre-LN) ---
    m = _layernorm(x, g2_ref[0], b2_ref[0])
    m = jnp.dot(m.astype(bf16), w1_ref[0], preferred_element_type=f32) + bf1_ref[0]
    m = 0.5 * m * (1.0 + jax.lax.erf(m * INV_SQRT2))          # exact (erf) GELU, fp32
    m = jnp.dot(m.astype(bf16), w2_ref[0], preferred_element_type=f32) + bf2_ref[0]
    x = x + m                                                             # fp32 residual
    x_ref[...] = x

    # ---- head on last depth step: mean pool -> fc LayerNorm -> classifier ----
    @pl.when(d == last)
    def _():
        pooled = jnp.mean(x, axis=0, keepdims=True)                       # (1, C)
        hc = _layernorm(pooled, fng_ref[...], fnb_ref[...])
        logits = jnp.dot(hc.astype(bf16), hw_ref[...],
                         preferred_element_type=f32) + hb_ref[...]        # (1, HEAD_PAD)
        o_ref[0] = logits.astype(o_ref.dtype)


# ----------------------------- pallas_call wrapper ----------------------------------
def extract_patches(x):
    # x: (B, C, T, H, W)  ->  (B, N_tokens, C*kt*kh*kw)
    # token order (t, h, w); feature order (c, dt, dh, dw) == Conv3d weight flatten order.
    # TODO(synk): at production sizes do this inside the kernel's DMA path instead.
    B = x.shape[0]
    xr = x.reshape(B, IN_CHANS, GT, TUBELET, GH, PATCH[0], GW, PATCH[1])
    xr = xr.transpose(0, 2, 4, 6, 1, 3, 5, 7)   # (B, GT, GH, GW, C, kt, kh, kw)
    return xr.reshape(B, N_TOKENS, PATCH_DIM)


@jax.jit
def mvd_vit_forward(x, params):
    B = x.shape[0]
    patches = extract_patches(x).astype(jnp.bfloat16)

    args = (patches, params['patch_w'], params['patch_b'], params['pos'],
            params['g1'], params['b1'], params['wqkv'], params['bqkv'],
            params['wproj'], params['bproj'], params['g2'], params['b2'],
            params['w1'], params['bf1'], params['w2'], params['bf2'],
            params['fc_norm_g'], params['fc_norm_b'],
            params['head_w'], params['head_b'])

    const2 = lambda b, d: (0, 0)          # depth/batch-invariant 2D operands
    perd3 = lambda b, d: (d, 0, 0)        # per-block stacked weights (streamed over depth)

    in_specs = [
        pl.BlockSpec((1, N_TOKENS, PATCH_DIM), lambda b, d: (b, 0, 0)),   # patches
        pl.BlockSpec((PATCH_DIM, EMBED), const2),                         # patch_w
        pl.BlockSpec((1, EMBED), const2),                                 # patch_b
        pl.BlockSpec((N_TOKENS, EMBED), const2),                          # pos
        pl.BlockSpec((1, 1, EMBED), perd3),                               # g1
        pl.BlockSpec((1, 1, EMBED), perd3),                               # b1
        pl.BlockSpec((1, EMBED, 3 * EMBED), perd3),                       # wqkv
        pl.BlockSpec((1, 1, 3 * EMBED), perd3),                           # bqkv
        pl.BlockSpec((1, EMBED, EMBED), perd3),                           # wproj
        pl.BlockSpec((1, 1, EMBED), perd3),                               # bproj
        pl.BlockSpec((1, 1, EMBED), perd3),                               # g2
        pl.BlockSpec((1, 1, EMBED), perd3),                               # b2
        pl.BlockSpec((1, EMBED, HIDDEN), perd3),                          # w1
        pl.BlockSpec((1, 1, HIDDEN), perd3),                              # bf1
        pl.BlockSpec((1, HIDDEN, EMBED), perd3),                          # w2
        pl.BlockSpec((1, 1, EMBED), perd3),                               # bf2
        pl.BlockSpec((1, EMBED), const2),                                 # fc_norm_g
        pl.BlockSpec((1, EMBED), const2),                                 # fc_norm_b
        pl.BlockSpec((EMBED, HEAD_PAD), const2),                          # head_w
        pl.BlockSpec((1, HEAD_PAD), const2),                              # head_b
    ]

    kern = functools.partial(fused_vit_kernel, num_heads=HEADS, head_dim=HEAD_DIM)

    out_pad = pl.pallas_call(
        kern,
        out_shape=jax.ShapeDtypeStruct((B, 1, HEAD_PAD), jnp.float32),
        grid=(B, DEPTH),
        in_specs=in_specs,
        out_specs=pl.BlockSpec((1, 1, HEAD_PAD), lambda b, d: (b, 0, 0)),
        scratch_shapes=[pltpu.VMEM((N_TOKENS, EMBED), jnp.float32)],
        compiler_params=pltpu.CompilerParams(
            dimension_semantics=("parallel", "arbitrary")),
    )(*args)

    # use_mean_pooling=True path; strip lane padding of the classifier.
    return out_pad[:, 0, :NUM_CLASSES]


# ----------------------------- parameter init ---------------------------------------
def init_params(key):
    std = 0.02
    keys = jax.random.split(key, 2 + 4 * DEPTH)
    k_patch, k_head = keys[0], keys[1]
    kb = keys[2:]

    def randn(k, shape):
        return jax.random.normal(k, shape, jnp.float32) * std

    # Per-block weights stacked along a leading DEPTH axis (matmul weights in bf16,
    # stored transposed: (in_features, out_features), i.e. x @ W == torch x @ W.T).
    # Attention scale folded into the q columns (fold in fp32, then cast).
    wqkv_list = []
    for d in range(DEPTH):
        w = randn(kb[4 * d + 0], (EMBED, 3 * EMBED))
        w = w.at[:, :EMBED].multiply(ATTN_SCALE)
        wqkv_list.append(w)
    wqkv = jnp.stack(wqkv_list).astype(jnp.bfloat16)
    wproj = jnp.stack([randn(kb[4 * d + 1], (EMBED, EMBED)) for d in range(DEPTH)]).astype(jnp.bfloat16)
    w1 = jnp.stack([randn(kb[4 * d + 2], (EMBED, HIDDEN)) for d in range(DEPTH)]).astype(jnp.bfloat16)
    w2 = jnp.stack([randn(kb[4 * d + 3], (HIDDEN, EMBED)) for d in range(DEPTH)]).astype(jnp.bfloat16)

    # qkv bias = cat(q_bias, zeros_like(v_bias), v_bias), as in MVD's Attention.forward
    # (attn scale folded into q bias too; zeros here).
    q_bias = jnp.zeros((DEPTH, 1, EMBED), jnp.float32)
    v_bias = jnp.zeros((DEPTH, 1, EMBED), jnp.float32)
    bqkv = jnp.concatenate([q_bias * ATTN_SCALE, jnp.zeros_like(v_bias), v_bias], axis=-1)

    # Classifier weights padded to a lane-dense width (HEAD_PAD=128), live cols = NUM_CLASSES.
    head_w = jnp.zeros((EMBED, HEAD_PAD), jnp.float32)
    head_w = head_w.at[:, :NUM_CLASSES].set(randn(k_head, (EMBED, NUM_CLASSES)))

    pos = get_3d_sincos_pos_embed(EMBED, GH, GW, GT, scale_t=None,
                                  use_cls_token=USE_CLS_TOKEN)

    return {
        # Conv3d weight (E, C, kt, kh, kw) stored flattened & transposed -> (PATCH_DIM, E)
        'patch_w': randn(k_patch, (PATCH_DIM, EMBED)).astype(jnp.bfloat16),
        'patch_b': jnp.zeros((1, EMBED), jnp.float32),
        'pos': jnp.asarray(pos),                              # (N_TOKENS, EMBED) fp32
        'g1': jnp.ones((DEPTH, 1, EMBED), jnp.float32),
        'b1': jnp.zeros((DEPTH, 1, EMBED), jnp.float32),
        'wqkv': wqkv, 'bqkv': bqkv,
        'wproj': wproj, 'bproj': jnp.zeros((DEPTH, 1, EMBED), jnp.float32),
        'g2': jnp.ones((DEPTH, 1, EMBED), jnp.float32),
        'b2': jnp.zeros((DEPTH, 1, EMBED), jnp.float32),
        'w1': w1, 'bf1': jnp.zeros((DEPTH, 1, HIDDEN), jnp.float32),
        'w2': w2, 'bf2': jnp.zeros((DEPTH, 1, EMBED), jnp.float32),
        'fc_norm_g': jnp.ones((1, EMBED), jnp.float32),
        'fc_norm_b': jnp.zeros((1, EMBED), jnp.float32),
        'head_w': head_w.astype(jnp.bfloat16),
        'head_b': jnp.zeros((1, HEAD_PAD), jnp.float32),
    }


if __name__ == "__main__":
    key = jax.random.PRNGKey(0)
    pkey, xkey = jax.random.split(key)
    params = init_params(pkey)
    x = jax.random.normal(xkey, (2, IN_CHANS, FRAMES, IMG[0], IMG[1]), jnp.float32)
    out = mvd_vit_forward(x, params)
    jax.block_until_ready(out)
    assert out.shape == (2, NUM_CLASSES) and out.dtype == jnp.float32
    assert bool(jnp.all(jnp.isfinite(out)))
    print("KERNEL_OK")
</pallas_src>

<mosaic_0001>
module attributes {stable_mosaic.version = 11 : i64} {
  func.func @fused_vit_kernel(%arg0: i32, %arg1: i32, %arg2: memref<1x8x384xbf16, #tpu.memory_space<vmem>>, %arg3: memref<384x128xbf16, #tpu.memory_space<vmem>>, %arg4: memref<1x128xf32, #tpu.memory_space<vmem>>, %arg5: memref<8x128xf32, #tpu.memory_space<vmem>>, %arg6: memref<1x1x128xf32, #tpu.memory_space<vmem>>, %arg7: memref<1x1x128xf32, #tpu.memory_space<vmem>>, %arg8: memref<1x128x384xbf16, #tpu.memory_space<vmem>>, %arg9: memref<1x1x384xf32, #tpu.memory_space<vmem>>, %arg10: memref<1x128x128xbf16, #tpu.memory_space<vmem>>, %arg11: memref<1x1x128xf32, #tpu.memory_space<vmem>>, %arg12: memref<1x1x128xf32, #tpu.memory_space<vmem>>, %arg13: memref<1x1x128xf32, #tpu.memory_space<vmem>>, %arg14: memref<1x128x512xbf16, #tpu.memory_space<vmem>>, %arg15: memref<1x1x512xf32, #tpu.memory_space<vmem>>, %arg16: memref<1x512x128xbf16, #tpu.memory_space<vmem>>, %arg17: memref<1x1x128xf32, #tpu.memory_space<vmem>>, %arg18: memref<1x128xf32, #tpu.memory_space<vmem>>, %arg19: memref<1x128xf32, #tpu.memory_space<vmem>>, %arg20: memref<128x128xbf16, #tpu.memory_space<vmem>>, %arg21: memref<1x128xf32, #tpu.memory_space<vmem>>, %arg22: memref<1x1x128xf32, #tpu.memory_space<vmem>>, %arg23: memref<8x128xf32, #tpu.memory_space<vmem>>) attributes {dimension_semantics = [#tpu.dimension_semantics<parallel>, #tpu.dimension_semantics<arbitrary>], iteration_bounds = array<i64: 2, 2>, scalar_prefetch = 0 : i64, scratch_operands = 1 : i64, tpu.core_type = #tpu.core_type<tc>, window_params = [{transform_indices = @transform_0, window_bounds = array<i64: 1, 8, 384>}, {pipeline_mode = #tpu.pipeline_mode<synchronous>, transform_indices = @transform_1, window_bounds = array<i64: 384, 128>}, {pipeline_mode = #tpu.pipeline_mode<synchronous>, transform_indices = @transform_2, window_bounds = array<i64: 1, 128>}, {pipeline_mode = #tpu.pipeline_mode<synchronous>, transform_indices = @transform_3, window_bounds = array<i64: 8, 128>}, {transform_indices = @transform_4, window_bounds = array<i64: 1, 1, 128>}, {transform_indices = @transform_5, window_bounds = array<i64: 1, 1, 128>}, {transform_indices = @transform_6, window_bounds = array<i64: 1, 128, 384>}, {transform_indices = @transform_7, window_bounds = array<i64: 1, 1, 384>}, {transform_indices = @transform_8, window_bounds = array<i64: 1, 128, 128>}, {transform_indices = @transform_9, window_bounds = array<i64: 1, 1, 128>}, {transform_indices = @transform_10, window_bounds = array<i64: 1, 1, 128>}, {transform_indices = @transform_11, window_bounds = array<i64: 1, 1, 128>}, {transform_indices = @transform_12, window_bounds = array<i64: 1, 128, 512>}, {transform_indices = @transform_13, window_bounds = array<i64: 1, 1, 512>}, {transform_indices = @transform_14, window_bounds = array<i64: 1, 512, 128>}, {transform_indices = @transform_15, window_bounds = array<i64: 1, 1, 128>}, {pipeline_mode = #tpu.pipeline_mode<synchronous>, transform_indices = @transform_16, window_bounds = array<i64: 1, 128>}, {pipeline_mode = #tpu.pipeline_mode<synchronous>, transform_indices = @transform_17, window_bounds = array<i64: 1, 128>}, {pipeline_mode = #tpu.pipeline_mode<synchronous>, transform_indices = @transform_18, window_bounds = array<i64: 128, 128>}, {pipeline_mode = #tpu.pipeline_mode<synchronous>, transform_indices = @transform_19, window_bounds = array<i64: 1, 128>}, {transform_indices = @transform_20, window_bounds = array<i64: 1, 1, 128>}]} {
    %c0_i32 = arith.constant 0 : i32
    %0 = arith.cmpi eq, %arg1, %c0_i32 : i32
    %1 = arith.extui %0 : i1 to i32
    %c0_i32_0 = arith.constant 0 : i32
    %2 = arith.cmpi ne, %1, %c0_i32_0 : i32
    scf.if %2 {
      %c0_61 = arith.constant 0 : index
      %c0_62 = arith.constant 0 : index
      %c0_63 = arith.constant 0 : index
      %129 = vector.load %arg2[%c0_61, %c0_62, %c0_63] : memref<1x8x384xbf16, #tpu.memory_space<vmem>>, vector<1x8x384xbf16>
      %130 = vector.shape_cast %129 : vector<1x8x384xbf16> to vector<8x384xbf16>
      %c0_64 = arith.constant 0 : index
      %c0_65 = arith.constant 0 : index
      %131 = vector.load %arg3[%c0_64, %c0_65] : memref<384x128xbf16, #tpu.memory_space<vmem>>, vector<384x128xbf16>
      %cst_66 = arith.constant dense<0.000000e+00> : vector<8x128xf32>
      %132 = tpu.matmul %130, %131, %cst_66 {dimension_numbers = #tpu.dot_dimension_numbers<[1], [0], [0], [1], [0, 0, 1, 1], [], []>} : vector<8x384xbf16>, vector<384x128xbf16>, vector<8x128xf32> -> vector<8x128xf32>
      %c0_67 = arith.constant 0 : index
      %c0_68 = arith.constant 0 : index
      %133 = vector.load %arg4[%c0_67, %c0_68] : memref<1x128xf32, #tpu.memory_space<vmem>>, vector<1x128xf32>
      %134 = vector.broadcast %133 : vector<1x128xf32> to vector<8x128xf32>
      %135 = arith.addf %132, %134 : vector<8x128xf32>
      %c0_69 = arith.constant 0 : index
      %c0_70 = arith.constant 0 : index
      %136 = vector.load %arg5[%c0_69, %c0_70] : memref<8x128xf32, #tpu.memory_space<vmem>>, vector<8x128xf32>
      %137 = arith.addf %135, %136 : vector<8x128xf32>
      %c0_71 = arith.constant 0 : index
      %c0_72 = arith.constant 0 : index
      %138 = vector.load %arg23[%c0_71, %c0_72] : memref<8x128xf32, #tpu.memory_space<vmem>>, vector<8x128xf32>
      tpu.vector_store %arg23[%c0_71, %c0_72], %137 {strides = array<i32>} : memref<8x128xf32, #tpu.memory_space<vmem>>, vector<8x128xf32>,
    } else {
    }
    %c0 = arith.constant 0 : index
    %c0_1 = arith.constant 0 : index
    %3 = vector.load %arg23[%c0, %c0_1] : memref<8x128xf32, #tpu.memory_space<vmem>>, vector<8x128xf32>
    %c0_2 = arith.constant 0 : index
    %c0_3 = arith.constant 0 : index
    %c0_4 = arith.constant 0 : index
    %4 = vector.load %arg6[%c0_2, %c0_3, %c0_4] : memref<1x1x128xf32, #tpu.memory_space<vmem>>, vector<1x1x128xf32>
    %5 = vector.shape_cast %4 : vector<1x1x128xf32> to vector<1x128xf32>
    %c0_5 = arith.constant 0 : index
    %c0_6 = arith.constant 0 : index
    %c0_7 = arith.constant 0 : index
    %6 = vector.load %arg7[%c0_5, %c0_6, %c0_7] : memref<1x1x128xf32, #tpu.memory_space<vmem>>, vector<1x1x128xf32>
    %7 = vector.shape_cast %6 : vector<1x1x128xf32> to vector<1x128xf32>
    %cst = arith.constant dense<0.000000e+00> : vector<8xf32>
    %8 = vector.multi_reduction <add>, %3, %cst [1] : vector<8x128xf32> to vector<8xf32>
    %9 = vector.shape_cast %8 : vector<8xf32> to vector<8x1xf32>
    %cst_8 = arith.constant 1.280000e+02 : f32
    %10 = vector.broadcast %cst_8 : f32 to vector<8x1xf32>
    %11 = arith.divf %9, %10 : vector<8x1xf32>
    %12 = vector.broadcast %11 : vector<8x1xf32> to vector<8x128xf32>
    %13 = arith.subf %3, %12 : vector<8x128xf32>
    %14 = arith.mulf %13, %13 : vector<8x128xf32>
    %cst_9 = arith.constant dense<0.000000e+00> : vector<8xf32>
    %15 = vector.multi_reduction <add>, %14, %cst_9 [1] : vector<8x128xf32> to vector<8xf32>
    %16 = vector.shape_cast %15 : vector<8xf32> to vector<8x1xf32>
    %cst_10 = arith.constant 1.280000e+02 : f32
    %17 = vector.broadcast %cst_10 : f32 to vector<8x1xf32>
    %18 = arith.divf %16, %17 : vector<8x1xf32>
    %19 = vector.broadcast %11 : vector<8x1xf32> to vector<8x128xf32>
    %20 = arith.subf %3, %19 : vector<8x128xf32>
    %cst_11 = arith.constant 9.99999974E-6 : f32
    %21 = vector.broadcast %cst_11 : f32 to vector<8x1xf32>
    %22 = arith.addf %18, %21 : vector<8x1xf32>
    %23 = math.rsqrt %22 : vector<8x1xf32>
    %24 = vector.broadcast %23 : vector<8x1xf32> to vector<8x128xf32>
    %25 = arith.mulf %20, %24 : vector<8x128xf32>
    %26 = vector.broadcast %5 : vector<1x128xf32> to vector<8x128xf32>
    %27 = arith.mulf %25, %26 : vector<8x128xf32>
    %28 = vector.broadcast %7 : vector<1x128xf32> to vector<8x128xf32>
    %29 = arith.addf %27, %28 : vector<8x128xf32>
    %30 = arith.truncf %29 : vector<8x128xf32> to vector<8x128xbf16>
    %c0_12 = arith.constant 0 : index
    %c0_13 = arith.constant 0 : index
    %c0_14 = arith.constant 0 : index
    %31 = vector.load %arg8[%c0_12, %c0_13, %c0_14] : memref<1x128x384xbf16, #tpu.memory_space<vmem>>, vector<1x128x384xbf16>
    %32 = vector.shape_cast %31 : vector<1x128x384xbf16> to vector<128x384xbf16>
    %cst_15 = arith.constant dense<0.000000e+00> : vector<8x384xf32>
    %33 = tpu.matmul %30, %32, %cst_15 {dimension_numbers = #tpu.dot_dimension_numbers<[1], [0], [0], [1], [0, 0, 1, 1], [], []>} : vector<8x128xbf16>, vector<128x384xbf16>, vector<8x384xf32> -> vector<8x384xf32>
    %c0_16 = arith.constant 0 : index
    %c0_17 = arith.constant 0 : index
    %c0_18 = arith.constant 0 : index
    %34 = vector.load %arg9[%c0_16, %c0_17, %c0_18] : memref<1x1x384xf32, #tpu.memory_space<vmem>>, vector<1x1x384xf32>
    %35 = vector.shape_cast %34 : vector<1x1x384xf32> to vector<1x384xf32>
    %36 = vector.broadcast %35 : vector<1x384xf32> to vector<8x384xf32>
    %37 = arith.addf %33, %36 : vector<8x384xf32>
    %38 = vector.extract_strided_slice %37 {offsets = [0, 0], sizes = [8, 128], strides = [1, 1]} : vector<8x384xf32> to vector<8x128xf32>
    %39 = arith.truncf %38 : vector<8x128xf32> to vector<8x128xbf16>
    %40 = vector.shape_cast %39 : vector<8x128xbf16> to vector<8x4x32xbf16>
    %41 = tpu.transpose %40, [1, 0, 2] : vector<8x4x32xbf16> -> vector<4x8x32xbf16>
    %42 = vector.extract_strided_slice %37 {offsets = [0, 128], sizes = [8, 128], strides = [1, 1]} : vector<8x384xf32> to vector<8x128xf32>
    %43 = arith.truncf %42 : vector<8x128xf32> to vector<8x128xbf16>
    %44 = vector.shape_cast %43 : vector<8x128xbf16> to vector<8x4x32xbf16>
    %45 = tpu.transpose %44, [1, 0, 2] : vector<8x4x32xbf16> -> vector<4x8x32xbf16>
    %46 = vector.extract_strided_slice %37 {offsets = [0, 256], sizes = [8, 128], strides = [1, 1]} : vector<8x384xf32> to vector<8x128xf32>
    %47 = arith.truncf %46 : vector<8x128xf32> to vector<8x128xbf16>
    %48 = vector.shape_cast %47 : vector<8x128xbf16> to vector<8x4x32xbf16>
    %49 = tpu.transpose %48, [1, 0, 2] : vector<8x4x32xbf16> -> vector<4x8x32xbf16>
    "tpu.trace_start"() <{level = 10 : i32, message = "hnd,hmd->hnm"}> : () -> ()
    %cst_19 = arith.constant dense<0.000000e+00> : vector<4x8x8xf32>
    %50 = tpu.matmul %41, %45, %cst_19 {dimension_numbers = #tpu.dot_dimension_numbers<[2], [2], [1], [1], [0, 0, 0, 1, 1, 1], [0], [0]>} : vector<4x8x32xbf16>, vector<4x8x32xbf16>, vector<4x8x8xf32> -> vector<4x8x8xf32>
    "tpu.trace_stop"() : () -> ()
    %cst_20 = arith.constant dense<0xFF800000> : vector<4x8xf32>
    %51 = vector.multi_reduction <maximumf>, %50, %cst_20 [2] : vector<4x8x8xf32> to vector<4x8xf32>
    %52 = vector.shape_cast %51 : vector<4x8xf32> to vector<4x8x1xf32>
    %53 = vector.broadcast %52 : vector<4x8x1xf32> to vector<4x8x8xf32>
    %54 = arith.subf %50, %53 : vector<4x8x8xf32>
    %55 = math.exp %54 : vector<4x8x8xf32>
    %cst_21 = arith.constant dense<0.000000e+00> : vector<4x8xf32>
    %56 = vector.multi_reduction <add>, %55, %cst_21 [2] : vector<4x8x8xf32> to vector<4x8xf32>
    %57 = vector.shape_cast %56 : vector<4x8xf32> to vector<4x8x1xf32>
    %58 = tpu.reciprocal %57 {approx = true} : vector<4x8x1xf32> -> vector<4x8x1xf32>
    %59 = vector.broadcast %58 : vector<4x8x1xf32> to vector<4x8x8xf32>
    %60 = arith.mulf %55, %59 : vector<4x8x8xf32>
    %61 = arith.truncf %60 : vector<4x8x8xf32> to vector<4x8x8xbf16>
    "tpu.trace_start"() <{level = 10 : i32, message = "hnm,hmd->hnd"}> : () -> ()
    %cst_22 = arith.constant dense<0.000000e+00> : vector<4x8x32xf32>
    %62 = tpu.matmul %61, %49, %cst_22 {dimension_numbers = #tpu.dot_dimension_numbers<[2], [1], [1], [2], [0, 0, 0, 1, 1, 2], [0], [0]>} : vector<4x8x8xbf16>, vector<4x8x32xbf16>, vector<4x8x32xf32> -> vector<4x8x32xf32>
    "tpu.trace_stop"() : () -> ()
    %63 = tpu.transpose %62, [1, 0, 2] : vector<4x8x32xf32> -> vector<8x4x32xf32>
    %64 = vector.shape_cast %63 : vector<8x4x32xf32> to vector<8x128xf32>
    %65 = arith.truncf %64 : vector<8x128xf32> to vector<8x128xbf16>
    %c0_23 = arith.constant 0 : index
    %c0_24 = arith.constant 0 : index
    %c0_25 = arith.constant 0 : index
    %66 = vector.load %arg10[%c0_23, %c0_24, %c0_25] : memref<1x128x128xbf16, #tpu.memory_space<vmem>>, vector<1x128x128xbf16>
    %67 = vector.shape_cast %66 : vector<1x128x128xbf16> to vector<128x128xbf16>
    %cst_26 = arith.constant dense<0.000000e+00> : vector<8x128xf32>
    %68 = tpu.matmul %65, %67, %cst_26 {dimension_numbers = #tpu.dot_dimension_numbers<[1], [0], [0], [1], [0, 0, 1, 1], [], []>} : vector<8x128xbf16>, vector<128x128xbf16>, vector<8x128xf32> -> vector<8x128xf32>
    %c0_27 = arith.constant 0 : index
    %c0_28 = arith.constant 0 : index
    %c0_29 = arith.constant 0 : index
    %69 = vector.load %arg11[%c0_27, %c0_28, %c0_29] : memref<1x1x128xf32, #tpu.memory_space<vmem>>, vector<1x1x128xf32>
    %70 = vector.shape_cast %69 : vector<1x1x128xf32> to vector<1x128xf32>
    %71 = vector.broadcast %70 : vector<1x128xf32> to vector<8x128xf32>
    %72 = arith.addf %68, %71 : vector<8x128xf32>
    %73 = arith.addf %3, %72 : vector<8x128xf32>
    %c0_30 = arith.constant 0 : index
    %c0_31 = arith.constant 0 : index
    %c0_32 = arith.constant 0 : index
    %74 = vector.load %arg12[%c0_30, %c0_31, %c0_32] : memref<1x1x128xf32, #tpu.memory_space<vmem>>, vector<1x1x128xf32>
    %75 = vector.shape_cast %74 : vector<1x1x128xf32> to vector<1x128xf32>
    %c0_33 = arith.constant 0 : index
    %c0_34 = arith.constant 0 : index
    %c0_35 = arith.constant 0 : index
    %76 = vector.load %arg13[%c0_33, %c0_34, %c0_35] : memref<1x1x128xf32, #tpu.memory_space<vmem>>, vector<1x1x128xf32>
    %77 = vector.shape_cast %76 : vector<1x1x128xf32> to vector<1x128xf32>
    %cst_36 = arith.constant dense<0.000000e+00> : vector<8xf32>
    %78 = vector.multi_reduction <add>, %73, %cst_36 [1] : vector<8x128xf32> to vector<8xf32>
    %79 = vector.shape_cast %78 : vector<8xf32> to vector<8x1xf32>
    %cst_37 = arith.constant 1.280000e+02 : f32
    %80 = vector.broadcast %cst_37 : f32 to vector<8x1xf32>
    %81 = arith.divf %79, %80 : vector<8x1xf32>
    %82 = vector.broadcast %81 : vector<8x1xf32> to vector<8x128xf32>
    %83 = arith.subf %73, %82 : vector<8x128xf32>
    %84 = arith.mulf %83, %83 : vector<8x128xf32>
    %cst_38 = arith.constant dense<0.000000e+00> : vector<8xf32>
    %85 = vector.multi_reduction <add>, %84, %cst_38 [1] : vector<8x128xf32> to vector<8xf32>
    %86 = vector.shape_cast %85 : vector<8xf32> to vector<8x1xf32>
    %cst_39 = arith.constant 1.280000e+02 : f32
    %87 = vector.broadcast %cst_39 : f32 to vector<8x1xf32>
    %88 = arith.divf %86, %87 : vector<8x1xf32>
    %89 = vector.broadcast %81 : vector<8x1xf32> to vector<8x128xf32>
    %90 = arith.subf %73, %89 : vector<8x128xf32>
    %cst_40 = arith.constant 9.99999974E-6 : f32
    %91 = vector.broadcast %cst_40 : f32 to vector<8x1xf32>
    %92 = arith.addf %88, %91 : vector<8x1xf32>
    %93 = math.rsqrt %92 : vector<8x1xf32>
    %94 = vector.broadcast %93 : vector<8x1xf32> to vector<8x128xf32>
    %95 = arith.mulf %90, %94 : vector<8x128xf32>
    %96 = vector.broadcast %75 : vector<1x128xf32> to vector<8x128xf32>
    %97 = arith.mulf %95, %96 : vector<8x128xf32>
    %98 = vector.broadcast %77 : vector<1x128xf32> to vector<8x128xf32>
    %99 = arith.addf %97, %98 : vector<8x128xf32>
    %100 = arith.truncf %99 : vector<8x128xf32> to vector<8x128xbf16>
    %c0_41 = arith.constant 0 : index
    %c0_42 = arith.constant 0 : index
    %c0_43 = arith.constant 0 : index
    %101 = vector.load %arg14[%c0_41, %c0_42, %c0_43] : memref<1x128x512xbf16, #tpu.memory_space<vmem>>, vector<1x128x512xbf16>
    %102 = vector.shape_cast %101 : vector<1x128x512xbf16> to vector<128x512xbf16>
    %cst_44 = arith.constant dense<0.000000e+00> : vector<8x512xf32>
    %103 = tpu.matmul %100, %102, %cst_44 {dimension_numbers = #tpu.dot_dimension_numbers<[1], [0], [0], [1], [0, 0, 1, 1], [], []>} : vector<8x128xbf16>, vector<128x512xbf16>, vector<8x512xf32> -> vector<8x512xf32>
    %c0_45 = arith.constant 0 : index
    %c0_46 = arith.constant 0 : index
    %c0_47 = arith.constant 0 : index
    %104 = vector.load %arg15[%c0_45, %c0_46, %c0_47] : memref<1x1x512xf32, #tpu.memory_space<vmem>>, vector<1x1x512xf32>
    %105 = vector.shape_cast %104 : vector<1x1x512xf32> to vector<1x512xf32>
    %106 = vector.broadcast %105 : vector<1x512xf32> to vector<8x512xf32>
    %107 = arith.addf %103, %106 : vector<8x512xf32>
    %cst_48 = arith.constant 5.000000e-01 : f32
    %108 = vector.broadcast %cst_48 : f32 to vector<8x512xf32>
    %109 = arith.mulf %108, %107 : vector<8x512xf32>
    %cst_49 = arith.constant 0.707106769 : f32
    %110 = vector.broadcast %cst_49 : f32 to vector<8x512xf32>
    %111 = arith.mulf %107, %110 : vector<8x512xf32>
    %112 = math.erf %111 : vector<8x512xf32>
    %cst_50 = arith.constant 1.000000e+00 : f32
    %113 = vector.broadcast %cst_50 : f32 to vector<8x512xf32>
    %114 = arith.addf %113, %112 : vector<8x512xf32>
    %115 = arith.mulf %109, %114 : vector<8x512xf32>
    %116 = arith.truncf %115 : vector<8x512xf32> to vector<8x512xbf16>
    %c0_51 = arith.constant 0 : index
    %c0_52 = arith.constant 0 : index
    %c0_53 = arith.constant 0 : index
    %117 = vector.load %arg16[%c0_51, %c0_52, %c0_53] : memref<1x512x128xbf16, #tpu.memory_space<vmem>>, vector<1x512x128xbf16>
    %118 = vector.shape_cast %117 : vector<1x512x128xbf16> to vector<512x128xbf16>
    %cst_54 = arith.constant dense<0.000000e+00> : vector<8x128xf32>
    %119 = tpu.matmul %116, %118, %cst_54 {dimension_numbers = #tpu.dot_dimension_numbers<[1], [0], [0], [1], [0, 0, 1, 1], [], []>} : vector<8x512xbf16>, vector<512x128xbf16>, vector<8x128xf32> -> vector<8x128xf32>
    %c0_55 = arith.constant 0 : index
    %c0_56 = arith.constant 0 : index
    %c0_57 = arith.constant 0 : index
    %120 = vector.load %arg17[%c0_55, %c0_56, %c0_57] : memref<1x1x128xf32, #tpu.memory_space<vmem>>, vector<1x1x128xf32>
    %121 = vector.shape_cast %120 : vector<1x1x128xf32> to vector<1x128xf32>
    %122 = vector.broadcast %121 : vector<1x128xf32> to vector<8x128xf32>
    %123 = arith.addf %119, %122 : vector<8x128xf32>
    %124 = arith.addf %73, %123 : vector<8x128xf32>
    %c0_58 = arith.constant 0 : index
    %c0_59 = arith.constant 0 : index
    %125 = vector.load %arg23[%c0_58, %c0_59] : memref<8x128xf32, #tpu.memory_space<vmem>>, vector<8x128xf32>
    tpu.vector_store %arg23[%c0_58, %c0_59], %124 {strides = array<i32>} : memref<8x128xf32, #tpu.memory_space<vmem>>, vector<8x128xf32>,
    %c1_i32 = arith.constant 1 : i32
    %126 = arith.cmpi eq, %arg1, %c1_i32 : i32
    %127 = arith.extui %126 : i1 to i32
    %c0_i32_60 = arith.constant 0 : i32
    %128 = arith.cmpi ne, %127, %c0_i32_60 : i32
    scf.if %128 {
      %cst_61 = arith.constant dense<0.000000e+00> : vector<128xf32>
      %129 = vector.multi_reduction <add>, %124, %cst_61 [0] : vector<8x128xf32> to vector<128xf32>
      %130 = vector.shape_cast %129 : vector<128xf32> to vector<1x128xf32>
      %cst_62 = arith.constant 8.000000e+00 : f32
      %131 = vector.broadcast %cst_62 : f32 to vector<1x128xf32>
      %132 = arith.divf %130, %131 : vector<1x128xf32>
      %c0_63 = arith.constant 0 : index
      %c0_64 = arith.constant 0 : index
      %133 = vector.load %arg18[%c0_63, %c0_64] : memref<1x128xf32, #tpu.memory_space<vmem>>, vector<1x128xf32>
      %c0_65 = arith.constant 0 : index
      %c0_66 = arith.constant 0 : index
      %134 = vector.load %arg19[%c0_65, %c0_66] : memref<1x128xf32, #tpu.memory_space<vmem>>, vector<1x128xf32>
      %cst_67 = arith.constant dense<0.000000e+00> : vector<1xf32>
      %135 = vector.multi_reduction <add>, %132, %cst_67 [1] : vector<1x128xf32> to vector<1xf32>
      %136 = vector.shape_cast %135 : vector<1xf32> to vector<1x1xf32>
      %cst_68 = arith.constant 1.280000e+02 : f32
      %137 = vector.broadcast %cst_68 : f32 to vector<1x1xf32>
      %138 = arith.divf %136, %137 : vector<1x1xf32>
      %139 = vector.broadcast %138 : vector<1x1xf32> to vector<1x128xf32>
      %140 = arith.subf %132, %139 : vector<1x128xf32>
      %141 = arith.mulf %140, %140 : vector<1x128xf32>
      %cst_69 = arith.constant dense<0.000000e+00> : vector<1xf32>
      %142 = vector.multi_reduction <add>, %141, %cst_69 [1] : vector<1x128xf32> to vector<1xf32>
      %143 = vector.shape_cast %142 : vector<1xf32> to vector<1x1xf32>
      %cst_70 = arith.constant 1.280000e+02 : f32
      %144 = vector.broadcast %cst_70 : f32 to vector<1x1xf32>
      %145 = arith.divf %143, %144 : vector<1x1xf32>
      %146 = vector.broadcast %138 : vector<1x1xf32> to vector<1x128xf32>
      %147 = arith.subf %132, %146 : vector<1x128xf32>
      %cst_71 = arith.constant 9.99999974E-6 : f32
      %148 = vector.broadcast %cst_71 : f32 to vector<1x1xf32>
      %149 = arith.addf %145, %148 : vector<1x1xf32>
      %150 = math.rsqrt %149 : vector<1x1xf32>
      %151 = vector.broadcast %150 : vector<1x1xf32> to vector<1x128xf32>
      %152 = arith.mulf %147, %151 : vector<1x128xf32>
      %153 = arith.mulf %152, %133 : vector<1x128xf32>
      %154 = arith.addf %153, %134 : vector<1x128xf32>
      %155 = arith.truncf %154 : vector<1x128xf32> to vector<1x128xbf16>
      %c0_72 = arith.constant 0 : index
      %c0_73 = arith.constant 0 : index
      %156 = vector.load %arg20[%c0_72, %c0_73] : memref<128x128xbf16, #tpu.memory_space<vmem>>, vector<128x128xbf16>
      %cst_74 = arith.constant dense<0.000000e+00> : vector<1x128xf32>
      %157 = tpu.matmul %155, %156, %cst_74 {dimension_numbers = #tpu.dot_dimension_numbers<[1], [0], [0], [1], [0, 0, 1, 1], [], []>} : vector<1x128xbf16>, vector<128x128xbf16>, vector<1x128xf32> -> vector<1x128xf32>
      %c0_75 = arith.constant 0 : index
      %c0_76 = arith.constant 0 : index
      %158 = vector.load %arg21[%c0_75, %c0_76] : memref<1x128xf32, #tpu.memory_space<vmem>>, vector<1x128xf32>
      %159 = arith.addf %157, %158 : vector<1x128xf32>
      %c0_77 = arith.constant 0 : index
      %c0_78 = arith.constant 0 : index
      %c0_79 = arith.constant 0 : index
      %160 = vector.load %arg22[%c0_77, %c0_78, %c0_79] : memref<1x1x128xf32, #tpu.memory_space<vmem>>, vector<1x1x128xf32>
      %161 = vector.shape_cast %160 : vector<1x1x128xf32> to vector<1x128xf32>
      %162 = vector.shape_cast %159 : vector<1x128xf32> to vector<1x1x128xf32>
      tpu.vector_store %arg22[%c0_77, %c0_78, %c0_79], %162 {strides = array<i32>} : memref<1x1x128xf32, #tpu.memory_space<vmem>>, vector<1x1x128xf32>,
    } else {
    }
    return
  }
  func.func @transform_0(%arg0: i32, %arg1: i32) -> (i32, i32, i32) {
    %c0_i32 = arith.constant 0 : i32
    %c0_i32_0 = arith.constant 0 : i32
    %c0_i32_1 = arith.constant 0 : i32
    return %arg0, %c0_i32, %c0_i32_0 : i32, i32, i32
  }
  func.func @transform_1(%arg0: i32, %arg1: i32) -> (i32, i32) {
    %c0_i32 = arith.constant 0 : i32
    %c0_i32_0 = arith.constant 0 : i32
    %c0_i32_1 = arith.constant 0 : i32
    return %c0_i32, %c0_i32_0 : i32, i32
  }
  func.func @transform_2(%arg0: i32, %arg1: i32) -> (i32, i32) {
    %c0_i32 = arith.constant 0 : i32
    %c0_i32_0 = arith.constant 0 : i32
    %c0_i32_1 = arith.constant 0 : i32
    return %c0_i32, %c0_i32_0 : i32, i32
  }
  func.func @transform_3(%arg0: i32, %arg1: i32) -> (i32, i32) {
    %c0_i32 = arith.constant 0 : i32
    %c0_i32_0 = arith.constant 0 : i32
    %c0_i32_1 = arith.constant 0 : i32
    return %c0_i32, %c0_i32_0 : i32, i32
  }
  func.func @transform_4(%arg0: i32, %arg1: i32) -> (i32, i32, i32) {
    %c0_i32 = arith.constant 0 : i32
    %c0_i32_0 = arith.constant 0 : i32
    %c0_i32_1 = arith.constant 0 : i32
    return %arg1, %c0_i32, %c0_i32_0 : i32, i32, i32
  }
  func.func @transform_5(%arg0: i32, %arg1: i32) -> (i32, i32, i32) {
    %c0_i32 = arith.constant 0 : i32
    %c0_i32_0 = arith.constant 0 : i32
    %c0_i32_1 = arith.constant 0 : i32
    return %arg1, %c0_i32, %c0_i32_0 : i32, i32, i32
  }
  func.func @transform_6(%arg0: i32, %arg1: i32) -> (i32, i32, i32) {
    %c0_i32 = arith.constant 0 : i32
    %c0_i32_0 = arith.constant 0 : i32
    %c0_i32_1 = arith.constant 0 : i32
    return %arg1, %c0_i32, %c0_i32_0 : i32, i32, i32
  }
  func.func @transform_7(%arg0: i32, %arg1: i32) -> (i32, i32, i32) {
    %c0_i32 = arith.constant 0 : i32
    %c0_i32_0 = arith.constant 0 : i32
    %c0_i32_1 = arith.constant 0 : i32
    return %arg1, %c0_i32, %c0_i32_0 : i32, i32, i32
  }
  func.func @transform_8(%arg0: i32, %arg1: i32) -> (i32, i32, i32) {
    %c0_i32 = arith.constant 0 : i32
    %c0_i32_0 = arith.constant 0 : i32
    %c0_i32_1 = arith.constant 0 : i32
    return %arg1, %c0_i32, %c0_i32_0 : i32, i32, i32
  }
  func.func @transform_9(%arg0: i32, %arg1: i32) -> (i32, i32, i32) {
    %c0_i32 = arith.constant 0 : i32
    %c0_i32_0 = arith.constant 0 : i32
    %c0_i32_1 = arith.constant 0 : i32
    return %arg1, %c0_i32, %c0_i32_0 : i32, i32, i32
  }
  func.func @transform_10(%arg0: i32, %arg1: i32) -> (i32, i32, i32) {
    %c0_i32 = arith.constant 0 : i32
    %c0_i32_0 = arith.constant 0 : i32
    %c0_i32_1 = arith.constant 0 : i32
    return %arg1, %c0_i32, %c0_i32_0 : i32, i32, i32
  }
  func.func @transform_11(%arg0: i32, %arg1: i32) -> (i32, i32, i32) {
    %c0_i32 = arith.constant 0 : i32
    %c0_i32_0 = arith.constant 0 : i32
    %c0_i32_1 = arith.constant 0 : i32
    return %arg1, %c0_i32, %c0_i32_0 : i32, i32, i32
  }
  func.func @transform_12(%arg0: i32, %arg1: i32) -> (i32, i32, i32) {
    %c0_i32 = arith.constant 0 : i32
    %c0_i32_0 = arith.constant 0 : i32
    %c0_i32_1 = arith.constant 0 : i32
    return %arg1, %c0_i32, %c0_i32_0 : i32, i32, i32
  }
  func.func @transform_13(%arg0: i32, %arg1: i32) -> (i32, i32, i32) {
    %c0_i32 = arith.constant 0 : i32
    %c0_i32_0 = arith.constant 0 : i32
    %c0_i32_1 = arith.constant 0 : i32
    return %arg1, %c0_i32, %c0_i32_0 : i32, i32, i32
  }
  func.func @transform_14(%arg0: i32, %arg1: i32) -> (i32, i32, i32) {
    %c0_i32 = arith.constant 0 : i32
    %c0_i32_0 = arith.constant 0 : i32
    %c0_i32_1 = arith.constant 0 : i32
    return %arg1, %c0_i32, %c0_i32_0 : i32, i32, i32
  }
  func.func @transform_15(%arg0: i32, %arg1: i32) -> (i32, i32, i32) {
    %c0_i32 = arith.constant 0 : i32
    %c0_i32_0 = arith.constant 0 : i32
    %c0_i32_1 = arith.constant 0 : i32
    return %arg1, %c0_i32, %c0_i32_0 : i32, i32, i32
  }
  func.func @transform_16(%arg0: i32, %arg1: i32) -> (i32, i32) {
    %c0_i32 = arith.constant 0 : i32
    %c0_i32_0 = arith.constant 0 : i32
    %c0_i32_1 = arith.constant 0 : i32
    return %c0_i32, %c0_i32_0 : i32, i32
  }
  func.func @transform_17(%arg0: i32, %arg1: i32) -> (i32, i32) {
    %c0_i32 = arith.constant 0 : i32
    %c0_i32_0 = arith.constant 0 : i32
    %c0_i32_1 = arith.constant 0 : i32
    return %c0_i32, %c0_i32_0 : i32, i32
  }
  func.func @transform_18(%arg0: i32, %arg1: i32) -> (i32, i32) {
    %c0_i32 = arith.constant 0 : i32
    %c0_i32_0 = arith.constant 0 : i32
    %c0_i32_1 = arith.constant 0 : i32
    return %c0_i32, %c0_i32_0 : i32, i32
  }
  func.func @transform_19(%arg0: i32, %arg1: i32) -> (i32, i32) {
    %c0_i32 = arith.constant 0 : i32
    %c0_i32_0 = arith.constant 0 : i32
    %c0_i32_1 = arith.constant 0 : i32
    return %c0_i32, %c0_i32_0 : i32, i32
  }
  func.func @transform_20(%arg0: i32, %arg1: i32) -> (i32, i32, i32) {
    %c0_i32 = arith.constant 0 : i32
    %c0_i32_0 = arith.constant 0 : i32
    %c0_i32_1 = arith.constant 0 : i32
    return %arg0, %c0_i32, %c0_i32_0 : i32, i32, i32
  }
}

</mosaic_0001>

<bundles_post_ra>
// kernel: mvd_vit_forward.1
= control target key start
LH: loop header
LB: loop body
LE: loop exit
PB: predicated region body
PF: predicated region fallthrough
CT: control target
= control target key end

     0   :  { %s5206_s0 = inlined_call_operand.vmem [shape: bf16[2,8,384], index: 0, kind: input, shape index: {}]   ;;  %s5207_s1 = inlined_call_operand.vmem [shape: bf16[384,128], index: 1, kind: input, shape index: {}]   ;;  %s5208_s2 = inlined_call_operand.vmem [shape: f32[1,128], index: 2, kind: input, shape index: {}]   ;;  %s5209_s3 = inlined_call_operand.vmem [shape: f32[8,128], index: 3, kind: input, shape index: {}]   ;;  %s5210_s4 = inlined_call_operand.vmem [shape: f32[2,1,128], index: 4, kind: input, shape index: {}]   ;;  %s5211_s5 = inlined_call_operand.vmem [shape: f32[2,1,128], index: 5, kind: input, shape index: {}]   ;;  %s5212_s6 = inlined_call_operand.vmem [shape: bf16[2,128,384], index: 6, kind: input, shape index: {}]   ;;  %s5213_s7 = inlined_call_operand.vmem [shape: f32[2,1,384], index: 7, kind: input, shape index: {}]   ;;  %s5214_s8 = inlined_call_operand.vmem [shape: bf16[2,128,128], index: 8, kind: input, shape index: {}]   ;;  %s5215_s9 = inlined_call_operand.vmem [shape: f32[2,1,128], index: 9, kind: input, shape index: {}]   ;;  %s5216_s10 = inlined_call_operand.vmem [shape: f32[2,1,128], index: 10, kind: input, shape index: {}]   ;;  %s5217_s11 = inlined_call_operand.vmem [shape: f32[2,1,128], index: 11, kind: input, shape index: {}]   ;;  %s5218_s12 = inlined_call_operand.vmem [shape: bf16[2,128,512], index: 12, kind: input, shape index: {}]   ;;  %s5219_s13 = inlined_call_operand.vmem [shape: f32[2,1,512], index: 13, kind: input, shape index: {}]   ;;  %s5220_s14 = inlined_call_operand.vmem [shape: bf16[2,512,128], index: 14, kind: input, shape index: {}]   ;;  %s5221_s15 = inlined_call_operand.vmem [shape: f32[2,1,128], index: 15, kind: input, shape index: {}]   ;;  %s5222_s16 = inlined_call_operand.vmem [shape: f32[1,128], index: 16, kind: input, shape index: {}]   ;;  %s5223_s17 = inlined_call_operand.vmem [shape: f32[1,128], index: 17, kind: input, shape index: {}]   ;;  %s5224_s18 = inlined_call_operand.vmem [shape: bf16[128,128], index: 18, kind: input, shape index: {}]   ;;  %s5225_s19 = inlined_call_operand.vmem [shape: f32[1,128], index: 19, kind: input, shape index: {}]   ;;  %s5226_s20 = inlined_call_operand.hbm [shape: f32[2,1,128], index: 20, kind: output, shape index: {}]  }
   0x1   :  { %5242 = sst [smem:[#allocation18_spill]] %s5206_s0 }
   0x2   :  { %5243 = sst [smem:[#allocation19_spill]] %s5207_s1 }
   0x3   :  { %5244 = sst [smem:[#allocation20_spill]] %s5208_s2 }
   0x4   :  { %5245 = sst [smem:[#allocation21_spill]] %s5209_s3 }
   0x5   :  { %5246 = sst [smem:[#allocation22_spill]] %s5210_s4 }
   0x6   :  { %5247 = sst [smem:[#allocation23_spill]] %s5212_s6 }
   0x7   :  { %5248 = sst [smem:[#allocation24_spill]] %s5213_s7 }
   0x8   :  { %5249 = sst [smem:[#allocation25_spill]] %s5214_s8 }
   0x9   :  { %5250 = sst [smem:[#allocation26_spill]] %s5222_s16 }
   0xa   :  { %5251 = sst [smem:[#allocation27_spill]] %s5223_s17 }
   0xb   :  { %5252 = sst [smem:[#allocation28_spill]] %s5224_s18 }
   0xc   :  { %5253 = sst [smem:[#allocation29_spill]] %s5225_s19 }
   0xd   :  { %5254 = sst [smem:[#allocation30_spill]] %s5226_s20 }
   0xe   :  { %25 = vsyncpa [#allocation4], 0 }
   0xf   :  { %27 = vsyncpa [#allocation4 + $0x1], 0  ;;  %s4551_s1 = smov 0   ;;  %s4553_s22 = smov 0  }
  0x10   :  { %s4555_s23 = smov 0   ;;  %s4557_s24 = smov 0  }
  0x11   :  { %s4559_s2 = smov 0   ;;  %s4561_s25 = smov 0  }
  0x12   :  { %s4563_s3 = smov 0   ;;  %s4565_s26 = smov 0  }
  0x13 LB: > { %5255 = sst [smem:[#allocation6_spill]] %s4403_s1  ;;  %s3649_s27 = sadd.s32 4294967295, %s4431_s26   ;;  %s4431_s26 = sphi %s4565_s26, %s33_s26   ;;  %s4427_s3 = sphi %s4563_s3, %s5304_s3   ;;  %s4423_s25 = sphi %s4561_s25, %s5303_s25   ;;  %s4419_s2 = sphi %s4559_s2, %s5302_s2   ;;  %s4415_s24 = sphi %s4557_s24, %s5301_s24   ;;  %s4411_s23 = sphi %s4555_s23, %s5300_s23   ;;  %s4407_s22 = sphi %s4553_s22, %s5306_s22   ;;  %s4403_s1 = sphi %s4551_s1, %s5305_s1  }
  0x14   : > { %5256 = sst [smem:[#allocation7_spill]] %s4411_s23  ;;  %s3650_s28 = sadd.s32 4294967294, %s4431_s26  }
  0x15   : > { %5257 = sst [smem:[#allocation8_spill]] %s4415_s24  ;;  %s42_s4 = sadd.s32 1, %s4423_s25 }
  0x16   : > { %5258 = sst [smem:[#allocation9_spill]] %s4419_s2  ;;  %p43_p0 = scmp.ge.s32.totalorder %s42_s4, 2 }
  0x17   : > { %5259 = sst [smem:[#allocation10_spill]] %s4423_s25  ;;  %s45_s29 = sadd.s32 1, %s4427_s3 }
  0x18   : > { %5260 = sst [smem:[#allocation11_spill]] %s4427_s3  ;;  %p547_p1 = scmp.ne.s32.totalorder %s4411_s23, %s4407_s22 }
  0x19   : > { %5261 = sst [smem:[#allocation12_spill]] %s4431_s26  ;;  %p548_p2 = scmp.eq.s32.totalorder %s3649_s27, 3 }
  0x1a   : > { %s5308_s4 = smov (%p43_p0, %s42_s4), 0  ;;  %s5310_s29 = smov (!%p43_p0, %s45_s29), %s4427_s3 }
  0x1b   : > { %5262 = sst [smem:[#allocation13_spill]] %s5308_s4  ;;  %p4600_p3 = por %p548_p2, %p547_p1 }
  0x1c   : > { %p553_p4 = scmp.ne.s32.totalorder %s4407_s22, %s4403_s1  ;;  %p47_p5 = scmp.ge.s32.totalorder %s5310_s29, 2 }
  0x1d   : > { %s5263_s30 = scalar_select %p4600_p3, 1, 0 }
  0x1e   : > { %p554_p6 = scmp.eq.s32.totalorder %s3650_s28, 3  ;;  %p3653_p7 = scmp.ge.s32.totalorder %s4431_s26, 1 }
  0x1f   : > { %5264 = sst [smem:[#allocation14_spill]] %s5263_s30  ;;  %p683_p8 = scmp.lt.s32.totalorder %s4431_s26, 5 }
  0x20   : > { %s5312_s29 = smov (%p47_p5, %s5310_s29), 0  ;;  %p4610_p9 = por %p554_p6, %p553_p4 }
  0x21   : > { %5265 = sst [smem:[#allocation15_spill]] %s5312_s29  ;;  %p684_p10 = pnand %p3653_p7, %p683_p8 }
  0x22   : > { %s5266_s0 = scalar_select %p4610_p9, 1, 0 }
  0x23   : > { %s534_s21 = ssub.s32 %s4427_s3, %s5312_s29  ;;  %s537_s27 = sadd.s32 1, %s4411_s23 }
  0x24   : > { %5267 = sst [smem:[#allocation16_spill]] %s5266_s0  ;;  %p535_p11 = scmp.eq.s32.totalorder %s534_s21, 0 }
  0x25   : > { %687 = sbr.rel (%p684_p10) target bundleno = 3509 (0xdb5), region = 100  ;;  %p786_p12 = scmp.lt.s32.totalorder (!%p684_p10), %s4419_s2, 1 }
  0x26   : > { %s4618_s4 = scalar_select %p535_p11, %s4411_s23, %s537_s27  }
  0x27   : > { %p791_p13 = scmp.lt.s32.totalorder (!%p684_p10), %s4415_s24, 1  ;;  %s5270_s30 = sld [smem:[#allocation18_spill]] (!%p684_p10) }
  0x28   : > { %5268 = sst [smem:[#allocation17_spill]] %s4618_s4  ;;  %s5271_s6 = sld [smem:[#allocation23_spill]] (!%p684_p10) }
  0x29   : > { %s5272_s8 = sld [smem:[#allocation25_spill]] (!%p684_p10)  ;;  %s5273_s7 = sld [smem:[#allocation24_spill]] (!%p684_p10) }
  0x2c   : > { %s787_s25 = scalar_select %p786_p12, %s4419_s2, 1 }
  0x2d   : > { %s4625_s1 = scalar_select %p791_p13, %s4415_s24, 1 }
  0x2e   : > { %s4065_s21 = smul.u32 12, %s787_s25 }
  0x2f   : > { %s4066_s19 = smul.u32 192, %s4625_s1  ;;  %s3816_s16 = sshll.u32 %s4625_s1, 6 }
  0x30   : > { %s4638_s2 = scalar_lea.vmem %s5270_s30, %s4065_s21  ;;  %s4067_s17 = smul.u32 3, %s4625_s1 }
  0x31   : > { %s4646_s24 = scalar_lea.vmem %s5271_s6, %s4066_s19  ;;  %s4651_s23 = scalar_lea.vmem %s5272_s8, %s3816_s16 }
  0x32   : > { %s4656_s20 = scalar_lea.vmem %s5273_s7, %s4067_s17  ;;  %s3817_s3 = sshll.u32 %s4625_s1, 8 }
  0x33   : > { %s3660_s16 = sshll.u32 %s4625_s1, 2  ;;  %s4675_s4 = scalar_lea.vmem %s5218_s12, %s3817_s3 }
  0x34   : > { %s4680_s26 = scalar_lea.vmem %s5219_s13, %s3660_s16  ;;  %s4685_s0 = scalar_lea.vmem %s5220_s14, %s3817_s3 }
  0x35   : > { %s836_s25 = scalar_lea.vmem %s5221_s15, %s4625_s1  ;;  %s5274_s6 = sand.u32 1, %s4407_s22  }
  0x36   : > { %s4693_s18 = scalar_lea.vmem [#allocation3], %s5274_s6  ;;  %s5275_s8 = sld [smem:[#allocation8_spill]] }
  0x3c   : > { %p3663_p0 = scmp.ne.s32.totalorder %s5275_s8, 0 }
  0x3d   : > { %s5276_s17 = sld [smem:[#allocation19_spill]] (!%p3663_p0)  ;;  %v4433_v2 = vmov (!%p3663_p0), 0.0   ;;  %vm4434_vm0 = vmmov (!%p3663_p0), 0   ;;  %v842_v21 = vld [vmem:[%s4638_s2] sm:$0xff] (!%p3663_p0)  ;;  %v4177_v28 = vld [vmem:[%s4638_s2 + $0x8] ss:$0 sps:$4 sm:$0xff] (!%p3663_p0)  }
  0x3e   : > { %841 = sbr.rel (%p3663_p0) target bundleno = 322 (0x142), region = 104  ;;  %3937 = vmatprep.subr.bf16.mxu1 (!%p3663_p0), %v4433_v2  ;;  %3953 = vmatprep.mubr.msk.bf16.mxu1 (!%p3663_p0), %vm4434_vm0, %v4433_v2  ;;  %v3666_v24 = vcombine.high (!%p3663_p0), %v842_v21, %v842_v21  ;;  %v3665_v27 = vcombine.low (!%p3663_p0), %v842_v21, %v842_v21  ;;  %s5277_s6 = sld [smem:[#allocation20_spill]] (!%p3663_p0) }
  0x3f   : > { %s5278_s2 = sld [smem:[#allocation21_spill]] (!%p3663_p0) }
  0x40   : > { %1086 = vmatprep.mubr.bf16.mxu0 (!%p3663_p0), %v3666_v24 }
  0x43   : > { %v4151_v0 = vld [vmem:[%s5276_s17 + $0x40] sm:$0xff] (!%p3663_p0)   ;;  %v4154_v4 = vld [vmem:[%s5276_s17 + $0x48] sm:$0xff] (!%p3663_p0)   ;;  %v4157_v7 = vld [vmem:[%s5276_s17 + $0x50] sm:$0xff] (!%p3663_p0)  }
  0x44   : > { %v4152_v1 = vld [vmem:[%s5276_s17] sm:$0xff] (!%p3663_p0)   ;;  %3819 = vmatprep.subr.bf16.mxu0 (!%p3663_p0), %v4151_v0  ;;  %v4155_v5 = vld [vmem:[%s5276_s17 + $0x8] sm:$0xff] (!%p3663_p0)   ;;  %v4158_v8 = vld [vmem:[%s5276_s17 + $0x10] sm:$0xff] (!%p3663_p0)  }
  0x45   : > { %v4153_v3 = vld [vmem:[%s5276_s17 + $0x80] sm:$0xff]   ;;  %3820 = vmatpush3.bf16.msra.mxu0 %v4152_v1  ;;  %v4156_v6 = vld [vmem:[%s5276_s17 + $0x88] sm:$0xff]   ;;  %v4159_v9 = vld [vmem:[%s5276_s17 + $0x90] sm:$0xff]  }
  0x46   : > { %3938 = vmatpush3.bf16.msra.mxu1 %v4153_v3  ;;  %3821 = vmatprep.subr.bf16.mxu0 %v4154_v4  ;;  %v4160_v10 = vld [vmem:[%s5276_s17 + $0x58] sm:$0xff]   ;;  %v4163_v13 = vld [vmem:[%s5276_s17 + $0x60] sm:$0xff]   ;;  %v4166_v16 = vld [vmem:[%s5276_s17 + $0x68] sm:$0xff]  }
  0x47   : > { %3939 = vmatprep.subr.bf16.mxu1 %v4433_v2  ;;  %v4161_v11 = vld [vmem:[%s5276_s17 + $0x18] sm:$0xff]   ;;  %v4164_v14 = vld [vmem:[%s5276_s17 + $0x20] sm:$0xff]   ;;  %v4167_v17 = vld [vmem:[%s5276_s17 + $0x28] sm:$0xff]  }
  0x48   : > { %v4162_v12 = vld [vmem:[%s5276_s17 + $0x98] sm:$0xff]   ;;  %v4165_v15 = vld [vmem:[%s5276_s17 + $0xa0] sm:$0xff]   ;;  %v4168_v18 = vld [vmem:[%s5276_s17 + $0xa8] sm:$0xff]  }
  0x49   : > { %3822 = vmatpush3.bf16.msra.mxu0 %v4155_v5  ;;  %v4169_v19 = vld [vmem:[%s5276_s17 + $0x70] sm:$0xff]   ;;  %v4172_v23 = vld [vmem:[%s5276_s17 + $0x78] sm:$0xff]   ;;  %v3664_v31 = vld [vmem:[%s5277_s6] ss:$0 sm:$0xff] }
  0x4a   : > { %3940 = vmatpush3.bf16.msra.mxu1 %v4156_v6  ;;  %3823 = vmatprep.subr.bf16.mxu0 %v4157_v7  ;;  %v4170_v20 = vld [vmem:[%s5276_s17 + $0x30] sm:$0xff]   ;;  %v4173_v25 = vld [vmem:[%s5276_s17 + $0x38] sm:$0xff]   ;;  %v1134_v40 = vld [vmem:[%s5278_s2] sm:$0xff] }
  0x4b   : > { %3941 = vmatprep.subr.bf16.mxu1 %v4433_v2  ;;  %v4171_v22 = vld [vmem:[%s5276_s17 + $0xb0] sm:$0xff]   ;;  %v4176_v26 = vld [vmem:[%s5276_s17 + $0xb8] sm:$0xff]  }
  0x4d   : > { %3824 = vmatpush3.bf16.msra.mxu0 %v4158_v8 }
  0x4e   : > { %3942 = vmatpush3.bf16.msra.mxu1 %v4159_v9  ;;  %3825 = vmatprep.subr.bf16.mxu0 %v4160_v10 }
  0x4f   : > { %3943 = vmatprep.subr.bf16.mxu1 %v4433_v2 }
  0x51   : > { %3826 = vmatpush3.bf16.msra.mxu0 %v4161_v11 }
  0x52   : > { %3944 = vmatpush3.bf16.msra.mxu1 %v4162_v12  ;;  %3827 = vmatprep.subr.bf16.mxu0 %v4163_v13 }
  0x53   : > { %3945 = vmatprep.subr.bf16.mxu1 %v4433_v2 }
  0x55   : > { %3828 = vmatpush3.bf16.msra.mxu0 %v4164_v14 }
  0x56   : > { %3946 = vmatpush3.bf16.msra.mxu1 %v4165_v15  ;;  %3829 = vmatprep.subr.bf16.mxu0 %v4166_v16 }
  0x57   : > { %3947 = vmatprep.subr.bf16.mxu1 %v4433_v2 }
  0x59   : > { %3830 = vmatpush3.bf16.msra.mxu0 %v4167_v17 }
  0x5a   : > { %3948 = vmatpush3.bf16.msra.mxu1 %v4168_v18  ;;  %3831 = vmatprep.subr.bf16.mxu0 %v4169_v19 }
  0x5b   : > { %3949 = vmatprep.subr.bf16.mxu1 %v4433_v2 }
  0x5d   : > { %3832 = vmatpush3.bf16.msra.mxu0 %v4170_v20 }
  0x5e   : > { %3950 = vmatpush3.bf16.msra.mxu1 %v4171_v22  ;;  %3833 = vmatprep.subr.bf16.mxu0 %v4172_v23 }
  0x5f   : > { %3951 = vmatprep.subr.bf16.mxu1 %v4433_v2 }
  0x61   : > { %3834 = vmatpush3.bf16.msra.mxu0 %v4173_v25 }
  0x62   : > { %3952 = vmatpush3.bf16.msra.mxu1 %v4176_v26 }
  0x64   : > { %1087 = vmatmul.mubr.bf16.vlgmr.msra.gmra.mrb[0].mxu0 %v3665_v27 }
  0x65   : > { %3954 = vmatmul.mubr.bf16.vlgmr.msra.gmra.mrb[0].mxu1 %v4177_v28 }
 0x137   : > { %v3835_v29 = vpop.f32.mrb[0].mxu0 }
 0x138   : > { %v3836_v30 = vpop.f32.mrb[1].mxu0  ;;  %v1128_v32 = vpop.f32.mrb[0].mxu1 }
 0x139   : > { %v3837_v33 = vadd.f32 %v3836_v30, %v3835_v29  ;;  %v3838_v34 = vpop.f32.mrb[2].mxu0  ;;  %v3955_v35 = vpop.f32.mrb[1].mxu1 }
 0x13a   : > { %v3839_v36 = vpop.f32.mrb[3].mxu0  ;;  %v1131_v37 = vpop.f32.mrb[2].mxu1 }
 0x13b   : > { %v1089_v38 = vadd.f32 %v3837_v33, %v3664_v31  ;;  %v3956_v39 = vpop.f32.mrb[3].mxu1 }
 0x13d   : > { %v1129_v41 = vadd.f32 %v1128_v32, %v1089_v38 }
 0x13f   : > { %v1135_v42 = vadd.f32 %v1134_v40, %v1129_v41 }
 0x141   : > { %1136 = vst [vmem:[#allocation2] sm:$0xff] %v1135_v42 }
 0x142 PF: > { %v4178_v44 = vld [vmem:[%s4646_s24 + $0x4] ss:$12 sps:$4 sm:$0xff]   ;;  %v4180_v45 = vld [vmem:[%s4646_s24] ss:$12 sps:$4 sm:$0xff]   ;;  %v4435_v46 = vmov 0.0   ;;  %v4436_v4 = vmov 0   ;;  %s5281_s27 = scalar_lea.vmem %s5211_s5, %s4625_s1  ;;  %v1201_v20 = vlaneseq  ;;  %s5282_s30 = scalar_lea.vmem %s5215_s9, %s4625_s1 }
 0x143   : > { %3957 = vmatprep.subr.bf16.mxu1 %v4435_v46  ;;  %v4181_v47 = vld [vmem:[%s4646_s24 + $0x8] ss:$12 sps:$4 sm:$0xff]   ;;  %v4184_v49 = vld [vmem:[%s4646_s24 + $0x18] ss:$12 sps:$4 sm:$0xff]   ;;  %1344 = vmatprep.subr.bf16.mxu0 %v4178_v44  ;;  %v4185_v50 = vld [vmem:[%s4646_s24 + $0x20] ss:$12 sps:$4 sm:$0xff]   ;;  %s5283_s2 = scalar_lea.vmem %s5216_s10, %s4625_s1 }
 0x144   : > { %v4182_v48 = vld [vmem:[%s4646_s24 + $0x1c] ss:$12 sps:$4 sm:$0xff]   ;;  %v4186_v51 = vld [vmem:[%s4646_s24 + $0x34] ss:$12 sps:$4 sm:$0xff]   ;;  %1345 = vmatpush1.bf16.msra.mxu0 %v4180_v45  ;;  %3958 = vmatpush3.bf16.msra.mxu1 %v4181_v47  ;;  %v4189_v57 = vld [vmem:[%s4646_s24 + $0x38] ss:$12 sps:$4 sm:$0xff]  }
 0x145   : > { %1346 = vmatprep.subr.bf16.mxu0 %v4182_v48  ;;  %3959 = vmatprep.subr.bf16.mxu1 %v4435_v46  ;;  %v4188_v56 = vld [vmem:[%s4646_s24 + $0x30] ss:$12 sps:$4 sm:$0xff]   ;;  %v4190_v58 = vld [vmem:[%s4646_s24 + $0x4c] ss:$12 sps:$4 sm:$0xff]   ;;  %v4192_v59 = vld [vmem:[%s4646_s24 + $0x48] ss:$12 sps:$4 sm:$0xff]  }
 0x146   : > { %v4193_v60 = vld [vmem:[%s4646_s24 + $0x50] ss:$12 sps:$4 sm:$0xff]   ;;  %v4196_v62 = vld [vmem:[%s4646_s24 + $0x60] ss:$12 sps:$4 sm:$0xff]   ;;  %v4197_v63 = vld [vmem:[%s4646_s24 + $0x68] ss:$12 sps:$4 sm:$0xff]   ;;  %1376 = vmatprep.mubr.bf16.mxu0 %v4436_v4 }
 0x147   : > { %v4194_v61 = vld [vmem:[%s4646_s24 + $0x64] ss:$12 sps:$4 sm:$0xff]   ;;  %v4198_v0 = vld [vmem:[%s4646_s24 + $0x7c] ss:$12 sps:$4 sm:$0xff]   ;;  %v4201_v2 = vld [vmem:[%s4646_s24 + $0x80] ss:$12 sps:$4 sm:$0xff]  }
 0x148   : > { %v1137_v43 = vld [vmem:[#allocation2] sm:$0xff]  ;;  %1347 = vmatpush1.bf16.msra.mxu0 %v4184_v49  ;;  %3960 = vmatpush3.bf16.msra.mxu1 %v4185_v50  ;;  %vm4437_vm1 = vmmov 0   ;;  %v4204_v5 = vld [vmem:[%s4646_s24 + $0x90] ss:$12 sps:$4 sm:$0xff]   ;;  %v4206_v7 = vld [vmem:[%s4646_s24 + $0xac] ss:$12 sps:$4 sm:$0xff]  }
 0x149   : > { %1140 = vadd.xlane.f32.xlu0 %v1137_v43  ;;  %1348 = vmatprep.subr.bf16.mxu0 %v4186_v51  ;;  %v4200_v1 = vld [vmem:[%s4646_s24 + $0x78] ss:$12 sps:$4 sm:$0xff]   ;;  %v4202_v3 = vld [vmem:[%s4646_s24 + $0x94] ss:$12 sps:$4 sm:$0xff]   ;;  %v4209_v9 = vld [vmem:[%s4646_s24 + $0xb0] ss:$12 sps:$4 sm:$0xff]  }
 0x14a   : > { %3961 = vmatprep.subr.bf16.mxu1 %v4435_v46  ;;  %3973 = vmatprep.mubr.msk.bf16.mxu1 %vm4437_vm1, %v4435_v46  ;;  %v4205_v6 = vld [vmem:[%s4646_s24 + $0x98] ss:$12 sps:$4 sm:$0xff]   ;;  %v4208_v8 = vld [vmem:[%s4646_s24 + $0xa8] ss:$12 sps:$4 sm:$0xff]   ;;  %s5279_s8 = sld [smem:[#allocation22_spill]]  ;;  %v4827_v21 = vshrl.u32 %v1201_v20, 7 }
 0x14b   : > { %v3693_v16 = vld [vmem:[%s5281_s27] ss:$0 sm:$0xff]  ;;  %s4439_s21 = smov 96   ;;  %s4440_s3 = smov 64   ;;  %v4441_v39 = vmov 1983009808  }
 0x14c   : > { %1349 = vmatpush1.bf16.msra.mxu0 %v4188_v56  ;;  %3962 = vmatpush3.bf16.msra.mxu1 %v4189_v57  ;;  %v1207_v22 = vsub.s32 1, %v4827_v21  ;;  %v4831_v23 = vld [vmem:[%s4656_s20] sm:$0x7]  ;;  %v1203_v25 = vsub.s32 0, %v4827_v21  ;;  %s4438_s20 = smov 32   ;;  %v1434_v40 = vunpack.c.l.s4 %v4441_v39  ;;  %vm1932_vm2 = vcmask 261120  }
 0x14d   : > { %3963 = vmatprep.subr.bf16.mxu1 %v4435_v46  ;;  %1350 = vmatprep.subr.bf16.mxu0 %v4190_v58  ;;  %v4442_v41 = vmov 1934713408   ;;  %vm2117_vm3 = vcmask 64512   ;;  %vm2169_vm4 = vcmask 1043456   ;;  %vm2500_vm5 = vcmask 523264  }
 0x14e   : > { %v1208_v24 = vrot.slane %v4831_v23, %v1207_v22  ;;  %v1204_v35 = vrot.slane %v4831_v23, %v1203_v25  ;;  %v1451_v42 = vunpack.c.l.s4 %v4442_v41  ;;  %vm2502_vm6 = vcmask 785408  }
 0x150   : > { %1351 = vmatpush1.bf16.msra.mxu0 %v4192_v59  ;;  %3964 = vmatpush3.bf16.msra.mxu1 %v4193_v60  ;;  %s5280_s29 = scalar_lea.vmem %s5279_s8, %s4625_s1  ;;  %v1452_v44 = vunpack.c.0.s8 %v1451_v42  ;;  %s5284_s8 = scalar_lea.vmem %s5217_s11, %s4625_s1 }
 0x151   : > { %3965 = vmatprep.subr.bf16.mxu1 %v4435_v46  ;;  %1352 = vmatprep.subr.bf16.mxu0 %v4194_v61  ;;  %v3692_v14 = vld [vmem:[%s5280_s29] ss:$0 sm:$0xff]  ;;  %s5285_s29 = sld [smem:[#allocation8_spill]] }
 0x152   : > { %v4852_v49 = vsub.s32 %v1452_v44, %v4827_v21 }
 0x154   : > { %1353 = vmatpush1.bf16.msra.mxu0 %v4196_v62  ;;  %3966 = vmatpush3.bf16.msra.mxu1 %v4197_v63 }
 0x155   : > { %1354 = vmatprep.subr.bf16.mxu0 %v4198_v0  ;;  %3967 = vmatprep.subr.bf16.mxu1 %v4435_v46 }
 0x157   : > { %p3804_p1 = scmp.ne.s32.totalorder %s5285_s29, 1 }
 0x158   : > { %1355 = vmatpush1.bf16.msra.mxu0 %v4200_v1  ;;  %3968 = vmatpush3.bf16.msra.mxu1 %v4201_v2  ;;  %s5286_s24 = sld [smem:[#allocation28_spill]] (!%p3804_p1)  ;;  %vm4444_vm7 = vmmov (!%p3804_p1), 0   ;;  %s5288_s1 = sld [smem:[#allocation26_spill]] (!%p3804_p1) }
 0x159   : > { %1356 = vmatprep.subr.bf16.mxu0 %v4202_v3  ;;  %3969 = vmatprep.subr.bf16.mxu1 %v4435_v46  ;;  %s5289_s27 = sld [smem:[#allocation27_spill]] (!%p3804_p1) }
 0x15c   : > { %1357 = vmatpush1.bf16.msra.mxu0 %v4204_v5  ;;  %3970 = vmatpush3.bf16.msra.mxu1 %v4205_v6 }
 0x15d   : > { %1358 = vmatprep.subr.bf16.mxu0 %v4206_v7  ;;  %3971 = vmatprep.subr.bf16.mxu1 %v4435_v46 }
 0x15e   : > { %s5287_s16 = smov (!%p3804_p1), %s5286_s24 }
 0x160   : > { %1359 = vmatpush1.bf16.msra.mxu0 %v4208_v8  ;;  %3972 = vmatpush3.bf16.msra.mxu1 %v4209_v9 }
 0x161   : > { %3977 = vmatprep.subr.bf16.mxu1 %v4435_v46  ;;  %4001 = vmatprep.subr.bf16.mxu0 %v4435_v46 }
 0x1d6   : > { %v1141_v52 = vpop.xlane.xlu0 %1140 }
 0x1d7   : > { %v1143_v53 = vmul.f32 0.0078125, %v1141_v52 }
 0x1d9   : > { %v1144_v54 = vsub.f32 %v1137_v43, %v1143_v53  ;;  %v1435_v43 = vunpack.c.0.s8 %v1434_v40 }
 0x1db   : > { %v1145_v55 = vmul.f32 %v1144_v54, %v1144_v54  ;;  %v4849_v45 = vsub.s32 %v1435_v43, %v4827_v21 }
 0x1dd   : > { %1146 = vadd.xlane.f32.xlu0 %v1145_v55 }
 0x26a   : > { %v1147_v10 = vpop.xlane.xlu0 %1146 }
 0x26b   : > { %v1148_v11 = vmul.f32 0.0078125, %v1147_v10 }
 0x26d   : > { %v1149_v12 = vadd.f32 1e-05, %v1148_v11 }
 0x26f   : > { %4298 = vrsqrt.f32 %v1149_v12 }
 0x279   : > { %v4299_v13 = vpop.eup %4298 }
 0x27a   : > { %v1151_v15 = vmul.f32 %v4299_v13, %v1144_v54 }
 0x27c   : > { %v1158_v17 = vmul.f32 %v3692_v14, %v1151_v15 }
 0x27e   : > { %v1165_v18 = vadd.f32 %v3693_v16, %v1158_v17 }
 0x280   : > { %v1166_v19 = vpack.c.bf16 %v1165_v18, %v1165_v18 }
 0x282   : > { %1377 = vmatmul.mubr.bf16.vlgmr.msra.gmra.mrb[0].mxu0 %v1166_v19  ;;  %3974 = vmatmul.mubr.bf16.vlgmr.msra.gmra.mrb[0].mxu1 %v1166_v19 }
 0x283   : > { %3979 = vmatprep.mubr.msk.bf16.mxu1 %vm4437_vm1, %v4435_v46  ;;  %4003 = vmatprep.mubr.msk.bf16.mxu0 %vm4437_vm1, %v4435_v46 }
 0x355   : > { %v1378_v26 = vpop.f32.mrb[0].mxu0  ;;  %v4837_v27 = vpop.f32.mrb[0].mxu1 }
 0x356   : > { %v1380_v28 = vpop.f32.mrb[1].mxu0  ;;  %v3975_v29 = vpop.f32.mrb[1].mxu1  ;;  %v1379_v37 = vadd.f32 %v1378_v26, %v1204_v35 }
 0x357   : > { %v1381_v30 = vadd.f32 %v1380_v28, %v1208_v24  ;;  %v1382_v31 = vpop.f32.mrb[2].mxu0  ;;  %v1422_v32 = vpop.f32.mrb[2].mxu1 }
 0x358   : > { %v1383_v33 = vpop.f32.mrb[3].mxu0  ;;  %v3976_v34 = vpop.f32.mrb[3].mxu1  ;;  %v1425_v38 = vpack.c.bf16 %v1379_v37, %v1379_v37 }
 0x359   : > { %v1594_v36 = vpack.c.bf16 %v1381_v30, %v1381_v30 }
 0x35a   : > { %v1439_v6 = vrot.slane %v1425_v38, %v4849_v45 }
 0x35b   : > { %1600 = vrot.lane.b32.xlu0 %v1594_v36, %s4438_s20  ;;  %1596 = vrot.lane.b32.xlu1 %v1594_v36, %s4439_s21  ;;  %v1608_v58 = vrot.slane %v1594_v36, %v4849_v45 }
 0x35f   : > { %1598 = vrot.lane.b32.xlu1 %v1594_v36, %s4440_s3 }
 0x363   : > { %1427 = vrot.lane.b32.xlu1 %v1425_v38, %s4439_s21 }
 0x367   : > { %1429 = vrot.lane.b32.xlu1 %v1425_v38, %s4440_s3 }
 0x36b   : > { %1431 = vrot.lane.b32.xlu1 %v1425_v38, %s4438_s20 }
 0x3cd   : > { %v1601_v47 = vpop.permute.xlu0 %1600  ;;  %v1597_v48 = vpop.permute.xlu1 %1596 }
 0x3ce   : > { %v1650_v50 = vrot.slane %v1601_v47, %v4849_v45  ;;  %v1642_v51 = vrot.slane %v1597_v48, %v4849_v45 }
 0x3d0   : > { %v1651_v52 = vcombine.low %v1642_v51, %v1650_v50  ;;  %v1652_v53 = vcombine.high %v1642_v51, %v1650_v50 }
 0x3d1   : > { %v1599_v54 = vpop.permute.xlu1 %1598 }
 0x3d2   : > { %v1659_v55 = vrot.slane %v1651_v52, %v4852_v49  ;;  %v1666_v56 = vrot.slane %v1652_v53, %v4852_v49  ;;  %v1616_v57 = vrot.slane %v1599_v54, %v4849_v45 }
 0x3d4   : > { %v1667_v59 = vcombine.high %v1659_v55, %v4436_v4  ;;  %v1617_v60 = vcombine.low %v1608_v58, %v1616_v57  ;;  %v1618_v61 = vcombine.high %v1608_v58, %v1616_v57  ;;  %v1668_v63 = vcombine.high %v1666_v56, %v4436_v4 }
 0x3d5   : > { %v1428_v62 = vpop.permute.xlu1 %1427  ;;  %v1674_v2 = vshrl.u32 %v1659_v55, 16  ;;  %v1690_v5 = vshrl.u32 %v1666_v56, 16 }
 0x3d6   : > { %v1625_v0 = vrot.slane %v1617_v60, %v4852_v49  ;;  %v1632_v1 = vrot.slane %v1618_v61, %v4852_v49  ;;  %v1682_v3 = vshrl.u32 %v1667_v59, 16  ;;  %v1698_v12 = vshrl.u32 %v1668_v63, 16 }
 0x3d7   : > { %v1473_v36 = vrot.slane %v1428_v62, %v4849_v45 }
 0x3d8   : > { %v1633_v7 = vcombine.high %v1625_v0, %v4436_v4  ;;  %v1634_v8 = vcombine.high %v1632_v1, %v4436_v4  ;;  %v1671_v9 = vpack.i.b16 %v1659_v55, %v1625_v0  ;;  %v1673_v10 = vshrl.u32 %v1625_v0, 16 }
 0x3d9   : > { %v1430_v11 = vpop.permute.xlu1 %1429  ;;  %v1687_v13 = vpack.i.b16 %v1666_v56, %v1632_v1  ;;  %v1689_v14 = vshrl.u32 %v1632_v1, 16 }
 0x3da   : > { %v1447_v15 = vrot.slane %v1430_v11, %v4849_v45  ;;  %v1675_v16 = vpack.i.b16 %v1674_v2, %v1673_v10  ;;  %v1679_v17 = vpack.i.b16 %v1667_v59, %v1633_v7  ;;  %v1681_v18 = vshrl.u32 %v1633_v7, 16 }
 0x3db   : > { %v1695_v19 = vpack.i.b16 %v1668_v63, %v1634_v8  ;;  %v1691_v20 = vpack.i.b16 %v1690_v5, %v1689_v14  ;;  %v1697_v24 = vshrl.u32 %v1634_v8, 16  ;;  %v1701_v26 = vcombine.low %v1671_v9, %v1687_v13 }
 0x3dc   : > { %v1448_v28 = vcombine.low %v1439_v6, %v1447_v15  ;;  %v1683_v29 = vpack.i.b16 %v1682_v3, %v1681_v18  ;;  %v1449_v31 = vcombine.high %v1439_v6, %v1447_v15 }
 0x3dd   : > { %v1709_v30 = vcombine.low %v1679_v17, %v1695_v19  ;;  %v1432_v32 = vpop.permute.xlu1 %1431  ;;  %v1699_v33 = vpack.i.b16 %v1698_v12, %v1697_v24  ;;  %v1726_v34 = vcombine.low %v1675_v16, %v1691_v20  ;;  %v1708_v40 = vrot.slane %v1701_v26, %v4849_v45 }
 0x3de   : > { %v1456_v35 = vrot.slane %v1448_v28, %v4852_v49  ;;  %v1463_v37 = vrot.slane %v1449_v31, %v4852_v49  ;;  %v1481_v38 = vrot.slane %v1432_v32, %v4849_v45 }
 0x3df   : > { %v1716_v39 = vrot.slane %v1709_v30, %v4849_v45  ;;  %v1734_v41 = vcombine.low %v1683_v29, %v1699_v33  ;;  %v1733_v50 = vrot.slane %v1726_v34, %v4849_v45 }
 0x3e0   : > { %v1464_v42 = vcombine.high %v1456_v35, %v4436_v4  ;;  %v1465_v43 = vcombine.high %v1463_v37, %v4436_v4  ;;  %v1482_v44 = vcombine.low %v1473_v36, %v1481_v38  ;;  %v1483_v47 = vcombine.high %v1473_v36, %v1481_v38 }
 0x3e1   : > { %v1717_v48 = vcombine.low %v1708_v40, %v1716_v39  ;;  %v1741_v51 = vrot.slane %v1734_v41, %v4849_v45  ;;  %v1504_v52 = vshrl.u32 %v1456_v35, 16  ;;  %v1520_v56 = vshrl.u32 %v1463_v37, 16 }
 0x3e2   : > { %v1490_v53 = vrot.slane %v1482_v44, %v4852_v49  ;;  %v1497_v54 = vrot.slane %v1483_v47, %v4852_v49  ;;  %v1512_v55 = vshrl.u32 %v1464_v42, 16  ;;  %v1528_v57 = vshrl.u32 %v1465_v43, 16 }
 0x3e3   : > { %v1742_v58 = vcombine.low %v1733_v50, %v1741_v51  ;;  %v1724_v1 = vrot.slane %v1717_v48, %v4852_v49 }
 0x3e4   : > { %v1498_v59 = vcombine.high %v1490_v53, %v4436_v4  ;;  %v1499_v60 = vcombine.high %v1497_v54, %v4436_v4  ;;  %v1502_v61 = vpack.i.b16 %v1490_v53, %v1456_v35  ;;  %v1505_v62 = vshrl.u32 %v1490_v53, 16 }
 0x3e5   : > { %v1518_v63 = vpack.i.b16 %v1497_v54, %v1463_v37  ;;  %v1521_v0 = vshrl.u32 %v1497_v54, 16  ;;  %v1749_v2 = vrot.slane %v1742_v58, %v4852_v49  ;;  %v1754_v30 = vshrl.u32 %v1724_v1, 16 }
 0x3e6   : > { %v1506_v3 = vpack.i.b16 %v1505_v62, %v1504_v52  ;;  %v1510_v5 = vpack.i.b16 %v1498_v59, %v1464_v42  ;;  %v1513_v6 = vshrl.u32 %v1498_v59, 16  ;;  %v1526_v7 = vpack.i.b16 %v1499_v60, %v1465_v43 }
 0x3e7   : > { %v1522_v8 = vpack.i.b16 %v1521_v0, %v1520_v56  ;;  %v1529_v9 = vshrl.u32 %v1499_v60, 16  ;;  %v1532_v10 = vcombine.low %v1502_v61, %v1518_v63  ;;  %v1753_v11 = vpack.i.b16 %v1749_v2, %v1724_v1 }
 0x3e8   : > { %v1514_v12 = vpack.i.b16 %v1513_v6, %v1512_v55  ;;  %v1540_v13 = vcombine.low %v1510_v5, %v1526_v7  ;;  %v1755_v28 = vshrl.u32 %v1749_v2, 16  ;;  %v1750_v36 = vcombine.high %v1749_v2, %v4436_v4 }
 0x3e9   : > { %v1530_v14 = vpack.i.b16 %v1529_v9, %v1528_v57  ;;  %v1557_v15 = vcombine.low %v1506_v3, %v1522_v8  ;;  %v1937_v16 = vsel %vm1932_vm2, %v1753_v11, 0  ;;  %v1539_v18 = vrot.slane %v1532_v10, %v4849_v45 }
 0x3ea   : > { %v1547_v17 = vrot.slane %v1540_v13, %v4849_v45  ;;  %3978 = vmatpush3.bf16.xpose.msra.mxu1 %v1937_v16  ;;  %v1756_v33 = vpack.i.b16 %v1755_v28, %v1754_v30  ;;  %v1725_v38 = vcombine.high %v1724_v1, %v4436_v4  ;;  %v1761_v43 = vshrl.u32 %v1750_v36, 16 }
 0x3eb   : > { %v1565_v19 = vcombine.low %v1514_v12, %v1530_v14  ;;  %3983 = vmatprep.subr.bf16.mxu1 %v4435_v46  ;;  %v1564_v24 = vrot.slane %v1557_v15, %v4849_v45  ;;  %v1211_v13 = vsub.s32 2, %v4827_v21 }
 0x3ec   : > { %v1548_v20 = vcombine.low %v1539_v18, %v1547_v17  ;;  %v1983_v35 = vsel %vm1932_vm2, %v1756_v33, 0  ;;  %v1759_v40 = vpack.i.b16 %v1750_v36, %v1725_v38  ;;  %v1760_v47 = vshrl.u32 %v1725_v38, 16 }
 0x3ed   : > { %v1572_v26 = vrot.slane %v1565_v19, %v4849_v45  ;;  %v1212_v14 = vrot.slane %v4831_v23, %v1211_v13 }
 0x3ee   : > { %v1555_v31 = vrot.slane %v1548_v20, %v4852_v49  ;;  %v2029_v42 = vsel %vm1932_vm2, %v1759_v40, 0  ;;  %v1762_v50 = vpack.i.b16 %v1761_v43, %v1760_v47 }
 0x3ef   : > { %v1573_v29 = vcombine.low %v1564_v24, %v1572_v26  ;;  %v1420_v15 = vadd.f32 %v4837_v27, %v1212_v14 }
 0x3f0   : > { %v1585_v39 = vshrl.u32 %v1555_v31, 16  ;;  %v1556_v48 = vcombine.high %v1555_v31, %v4436_v4  ;;  %v2075_v52 = vsel %vm1932_vm2, %v1762_v50, 0 }
 0x3f1   : > { %v1580_v32 = vrot.slane %v1573_v29, %v4852_v49  ;;  %v1763_v16 = vpack.c.bf16 %v1420_v15, %v1420_v15 }
 0x3f2   : > { %v1591_v54 = vshrl.u32 %v1556_v48, 16 }
 0x3f3   : > { %v1584_v34 = vpack.i.b16 %v1580_v32, %v1555_v31  ;;  %v1586_v37 = vshrl.u32 %v1580_v32, 16  ;;  %v1581_v44 = vcombine.high %v1580_v32, %v4436_v4 }
 0x3f5   : > { %3980 = vmatmul.mubr.msk.bf16.vlgmr.msra.gmra.mrb[4].mxu1 %vm1932_vm2, %v1584_v34  ;;  %v1587_v41 = vpack.i.b16 %v1586_v37, %v1585_v39  ;;  %v1590_v51 = vpack.i.b16 %v1581_v44, %v1556_v48  ;;  %v1592_v53 = vshrl.u32 %v1581_v44, 16 }
 0x3f6   : > { %3984 = vmatpush3.bf16.xpose.msra.mxu1 %v1983_v35  ;;  %3985 = vmatprep.mubr.msk.bf16.mxu1 %vm4437_vm1, %v4435_v46 }
 0x3f7   : > { %3989 = vmatprep.subr.bf16.mxu1 %v4435_v46  ;;  %v1593_v55 = vpack.i.b16 %v1592_v53, %v1591_v54 }
 0x3fd   : > { %3986 = vmatmul.mubr.msk.bf16.vlgmr.msra.gmra.mrb[8].mxu1 %vm1932_vm2, %v1587_v41 }
 0x3fe   : > { %3990 = vmatpush3.bf16.xpose.msra.mxu1 %v2029_v42  ;;  %3991 = vmatprep.mubr.msk.bf16.mxu1 %vm4437_vm1, %v4435_v46  ;;  %v1777_v42 = vrot.slane %v1763_v16, %v4849_v45 }
 0x3ff   : > { %3995 = vmatprep.subr.bf16.mxu1 %v4435_v46 }
 0x405   : > { %3992 = vmatmul.mubr.msk.bf16.vlgmr.msra.gmra.mrb[12].mxu1 %vm1932_vm2, %v1590_v51 }
 0x406   : > { %3996 = vmatpush3.bf16.xpose.msra.mxu1 %v2075_v52  ;;  %3997 = vmatprep.mubr.msk.bf16.mxu1 %vm4437_vm1, %v4435_v46 }
 0x407   : > { %4007 = vmatprep.subr.bf16.mxu1 %v4435_v46 }
 0x40d   : > { %3998 = vmatmul.mubr.msk.bf16.vlgmr.msra.gmra.mrb[16].mxu1 %vm1932_vm2, %v1593_v55 }
 0x40e   : > { %4009 = vmatprep.mubr.msk.bf16.mxu1 %vm4437_vm1, %v4435_v46 }
 0x4c8   : > { %v1973_v56 = vpop.f32.mrb[4].mxu1 }
 0x4c9   : > { %v3981_v57 = vpop.f32.mrb[5].mxu1  ;;  %v2118_v58 = vsel %vm2117_vm3, %v1973_v56, -inf }
 0x4ca   : > { %2119 = vmax.xlane.f32.xlu1 %v2118_v58  ;;  %v1976_v59 = vpop.f32.mrb[6].mxu1 }
 0x4cb   : > { %v3982_v60 = vpop.f32.mrb[7].mxu1 }
 0x4d0   : > { %v2019_v61 = vpop.f32.mrb[8].mxu1 }
 0x4d1   : > { %v3987_v62 = vpop.f32.mrb[9].mxu1  ;;  %v2121_v63 = vsel %vm2117_vm3, %v2019_v61, -inf }
 0x4d2   : > { %2122 = vmax.xlane.f32.xlu0 %v2121_v63  ;;  %v2022_v0 = vpop.f32.mrb[10].mxu1 }
 0x4d3   : > { %v3988_v1 = vpop.f32.mrb[11].mxu1 }
 0x4d8   : > { %v2065_v2 = vpop.f32.mrb[12].mxu1 }
 0x4d9   : > { %v3993_v3 = vpop.f32.mrb[13].mxu1  ;;  %v2124_v5 = vsel %vm2117_vm3, %v2065_v2, -inf }
 0x4da   : > { %2125 = vmax.xlane.f32.xlu1 %v2124_v5  ;;  %v2068_v6 = vpop.f32.mrb[14].mxu1 }
 0x4db   : > { %v3994_v7 = vpop.f32.mrb[15].mxu1 }
 0x4e0   : > { %v2111_v8 = vpop.f32.mrb[16].mxu1 }
 0x4e1   : > { %v3999_v9 = vpop.f32.mrb[17].mxu1  ;;  %v2127_v10 = vsel %vm2117_vm3, %v2111_v8, -inf }
 0x4e2   : > { %2128 = vmax.xlane.f32.xlu1 %v2127_v10  ;;  %v2114_v11 = vpop.f32.mrb[18].mxu1 }
 0x4e3   : > { %v4000_v12 = vpop.f32.mrb[19].mxu1 }
 0x4f3   : > { %1767 = vrot.lane.b32.xlu1 %v1763_v16, %s4440_s3 }
 0x557   : > { %v2120_v17 = vpop.xlane.xlu1 %2119 }
 0x558   : > { %v2130_v18 = vsub.f32 %v1973_v56, %v2120_v17 }
 0x55a   : > { %v2134_v19 = vmul.f32 1.442695, %v2130_v18 }
 0x55c   : > { %4300 = vpow2.f32 %v2134_v19 }
 0x55f   : > { %v2123_v20 = vpop.xlane.xlu0 %2122 }
 0x560   : > { %v2131_v24 = vsub.f32 %v2019_v61, %v2123_v20 }
 0x562   : > { %v2136_v26 = vmul.f32 1.442695, %v2131_v24 }
 0x564   : > { %4302 = vpow2.f32 %v2136_v26 }
 0x566   : > { %v4924_v28 = vpop.eup %4300 }
 0x567   : > { %v2142_v29 = vsel %vm2117_vm3, %v4924_v28, 0.0  ;;  %v2126_v30 = vpop.xlane.xlu1 %2125 }
 0x568   : > { %2143 = vadd.xlane.f32.xlu0 %v2142_v29  ;;  %v2132_v31 = vsub.f32 %v2065_v2, %v2126_v30 }
 0x56a   : > { %v2138_v32 = vmul.f32 1.442695, %v2132_v31 }
 0x56c   : > { %4304 = vpow2.f32 %v2138_v32 }
 0x56e   : > { %v4928_v23 = vpop.eup %4302 }
 0x56f   : > { %v2145_v27 = vsel %vm2117_vm3, %v4928_v23, 0.0  ;;  %v2129_v33 = vpop.xlane.xlu1 %2128 }
 0x570   : > { %2146 = vadd.xlane.f32.xlu1 %v2145_v27  ;;  %v2133_v34 = vsub.f32 %v2111_v8, %v2129_v33 }
 0x572   : > { %v2140_v35 = vmul.f32 1.442695, %v2133_v34 }
 0x573   : > { %v1768_v40 = vpop.permute.xlu1 %1767 }
 0x574   : > { %4306 = vpow2.f32 %v2140_v35  ;;  %v1785_v41 = vrot.slane %v1768_v40, %v4849_v45 }
 0x576   : > { %v4934_v36 = vpop.eup %4304  ;;  %v1786_v44 = vcombine.low %v1777_v42, %v1785_v41  ;;  %v1787_v47 = vcombine.high %v1777_v42, %v1785_v41 }
 0x577   : > { %v2148_v37 = vsel %vm2117_vm3, %v4934_v36, 0.0 }
 0x578   : > { %v1794_v50 = vrot.slane %v1786_v44, %v4852_v49  ;;  %v1801_v52 = vrot.slane %v1787_v47, %v4852_v49 }
 0x57a   : > { %v1802_v56 = vcombine.high %v1794_v50, %v4436_v4  ;;  %v1803_v59 = vcombine.high %v1801_v52, %v4436_v4  ;;  %v1842_v62 = vshrl.u32 %v1794_v50, 16  ;;  %v1858_v0 = vshrl.u32 %v1801_v52, 16 }
 0x57c   : > { %v1850_v63 = vshrl.u32 %v1802_v56, 16  ;;  %v1866_v6 = vshrl.u32 %v1803_v59, 16 }
 0x57e   : > { %1765 = vrot.lane.b32.xlu0 %v1763_v16, %s4439_s21  ;;  %v4938_v38 = vpop.eup %4306 }
 0x57f   : > { %v2151_v39 = vsel %vm2117_vm3, %v4938_v38, 0.0 }
 0x581   : > { %1769 = vrot.lane.b32.xlu1 %v1763_v16, %s4438_s20 }
 0x59d   : > { %2149 = vadd.xlane.f32.xlu0 %v2148_v37 }
 0x5a5   : > { %2152 = vadd.xlane.f32.xlu1 %v2151_v39 }
 0x5f5   : > { %v2144_v43 = vpop.xlane.xlu0 %2143 }
 0x5f6   : > { %4308 = vrcp.f32 %v2144_v43 }
 0x5f9   : > { %v1766_v51 = vpop.permute.xlu0 %1765 }
 0x5fa   : > { %v1811_v54 = vrot.slane %v1766_v51, %v4849_v45 }
 0x5fd   : > { %v2147_v48 = vpop.xlane.xlu1 %2146 }
 0x5fe   : > { %4310 = vrcp.f32 %v2147_v48 }
 0x600   : > { %v4309_v33 = vpop.eup %4308 }
 0x601   : > { %v1770_v53 = vpop.permute.xlu1 %1769  ;;  %v2158_v40 = vmul.f32 %v4309_v33, %v4924_v28 }
 0x602   : > { %v1819_v55 = vrot.slane %v1770_v53, %v4849_v45 }
 0x604   : > { %v1820_v57 = vcombine.low %v1811_v54, %v1819_v55  ;;  %v1821_v58 = vcombine.high %v1811_v54, %v1819_v55  ;;  %v2162_v55 = vpack.c.bf16 %v2158_v40, %v2158_v40 }
 0x606   : > { %v1828_v60 = vrot.slane %v1820_v57, %v4852_v49  ;;  %v1835_v61 = vrot.slane %v1821_v58, %v4852_v49 }
 0x608   : > { %v1836_v1 = vcombine.high %v1828_v60, %v4436_v4  ;;  %v1837_v2 = vcombine.high %v1835_v61, %v4436_v4  ;;  %v1840_v3 = vpack.i.b16 %v1828_v60, %v1794_v50  ;;  %v1843_v5 = vshrl.u32 %v1828_v60, 16  ;;  %v4311_v37 = vpop.eup %4310 }
 0x609   : > { %v1856_v7 = vpack.i.b16 %v1835_v61, %v1801_v52  ;;  %v1859_v8 = vshrl.u32 %v1835_v61, 16  ;;  %v2159_v47 = vmul.f32 %v4311_v37, %v4928_v23 }
 0x60a   : > { %v1844_v9 = vpack.i.b16 %v1843_v5, %v1842_v62  ;;  %v1848_v10 = vpack.i.b16 %v1836_v1, %v1802_v56  ;;  %v1851_v11 = vshrl.u32 %v1836_v1, 16  ;;  %v1864_v12 = vpack.i.b16 %v1837_v2, %v1803_v59  ;;  %v4213_v5 = vld [vmem:[%s4651_s23 + $0x18] sm:$0xff]  }
 0x60b   : > { %v1860_v14 = vpack.i.b16 %v1859_v8, %v1858_v0  ;;  %v1867_v15 = vshrl.u32 %v1837_v2, 16  ;;  %v1870_v16 = vcombine.low %v1840_v3, %v1856_v7  ;;  %v2163_v57 = vpack.c.bf16 %v2159_v47, %v2159_v47  ;;  %v4210_v2 = vld [vmem:[%s4651_s23] sm:$0xff]   ;;  %v4212_v3 = vld [vmem:[%s4651_s23 + $0x10] sm:$0xff]  }
 0x60c   : > { %v1852_v17 = vpack.i.b16 %v1851_v11, %v1850_v63  ;;  %v1878_v18 = vcombine.low %v1848_v10, %v1864_v12 }
 0x60d   : > { %v1868_v19 = vpack.i.b16 %v1867_v15, %v1866_v6  ;;  %v1895_v20 = vcombine.low %v1844_v9, %v1860_v14  ;;  %v1877_v24 = vrot.slane %v1870_v16, %v4849_v45  ;;  %v4215_v6 = vld [vmem:[%s4651_s23 + $0x28] sm:$0xff]  }
 0x60e   : > { %v1885_v26 = vrot.slane %v1878_v18, %v4849_v45 }
 0x60f   : > { %v1903_v29 = vcombine.low %v1852_v17, %v1868_v19  ;;  %v1902_v30 = vrot.slane %v1895_v20, %v4849_v45 }
 0x610   : > { %v1886_v27 = vcombine.low %v1877_v24, %v1885_v26 }
 0x611   : > { %v1910_v31 = vrot.slane %v1903_v29, %v4849_v45 }
 0x612   : > { %v1893_v32 = vrot.slane %v1886_v27, %v4852_v49 }
 0x613   : > { %v1911_v34 = vcombine.low %v1902_v30, %v1910_v31 }
 0x614   : > { %v1894_v35 = vcombine.high %v1893_v32, %v4436_v4  ;;  %v1923_v42 = vshrl.u32 %v1893_v32, 16 }
 0x615   : > { %v1918_v39 = vrot.slane %v1911_v34, %v4852_v49 }
 0x616   : > { %v1929_v48 = vshrl.u32 %v1894_v35, 16 }
 0x617   : > { %v1922_v41 = vpack.i.b16 %v1918_v39, %v1893_v32  ;;  %v1924_v43 = vshrl.u32 %v1918_v39, 16  ;;  %v1919_v44 = vcombine.high %v1918_v39, %v4436_v4 }
 0x619   : > { %v2171_v50 = vsel %vm2169_vm4, %v1922_v41, 0  ;;  %v1925_v51 = vpack.i.b16 %v1924_v43, %v1923_v42  ;;  %v1928_v52 = vpack.i.b16 %v1919_v44, %v1894_v35  ;;  %v1930_v53 = vshrl.u32 %v1919_v44, 16  ;;  %v4216_v43 = vld [vmem:[%s4651_s23 + $0x30] sm:$0xff]  }
 0x61a   : > { %4002 = vmatpush3.bf16.msra.mxu0 %v2171_v50 }
 0x61b   : > { %v2217_v54 = vsel %vm2169_vm4, %v1925_v51, 0  ;;  %4013 = vmatprep.subr.bf16.mxu0 %v4435_v46  ;;  %v1931_v28 = vpack.i.b16 %v1930_v53, %v1929_v48  ;;  %v2263_v56 = vsel %vm2169_vm4, %v1928_v52, 0 }
 0x61c   : > { %4008 = vmatpush3.bf16.msra.mxu1 %v2217_v54 }
 0x61d   : > { %4004 = vmatmul.mubr.msk.bf16.vlgmr.msra.gmra.mrb[4].mxu0 %vm2117_vm3, %v2162_v55  ;;  %4019 = vmatprep.subr.bf16.mxu1 %v4435_v46  ;;  %v2309_v23 = vsel %vm2169_vm4, %v1931_v28, 0 }
 0x61e   : > { %4014 = vmatpush3.bf16.msra.mxu0 %v2263_v56  ;;  %4015 = vmatprep.mubr.msk.bf16.mxu0 %vm4437_vm1, %v4435_v46 }
 0x61f   : > { %4010 = vmatmul.mubr.msk.bf16.vlgmr.msra.gmra.mrb[20].mxu1 %vm2117_vm3, %v2163_v57  ;;  %4025 = vmatprep.subr.bf16.mxu0 %v4435_v46 }
 0x620   : > { %4020 = vmatpush3.bf16.msra.mxu1 %v2309_v23  ;;  %4021 = vmatprep.mubr.msk.bf16.mxu1 %vm4437_vm1, %v4435_v46  ;;  %v4217_v23 = vld [vmem:[%s4651_s23 + $0x38] sm:$0xff]  }
 0x62a   : > { %v2150_v58 = vpop.xlane.xlu0 %2149 }
 0x62b   : > { %4312 = vrcp.f32 %v2150_v58 }
 0x632   : > { %v2153_v59 = vpop.xlane.xlu1 %2152 }
 0x633   : > { %4314 = vrcp.f32 %v2153_v59 }
 0x635   : > { %v4313_v60 = vpop.eup %4312 }
 0x636   : > { %v2160_v61 = vmul.f32 %v4313_v60, %v4934_v36  ;;  %v4211_v36 = vld [vmem:[%s4651_s23 + $0x8] sm:$0xff]  }
 0x638   : > { %v2164_v62 = vpack.c.bf16 %v2160_v61, %v2160_v61 }
 0x63a   : > { %4016 = vmatmul.mubr.msk.bf16.vlgmr.msra.gmra.mrb[8].mxu0 %vm2117_vm3, %v2164_v62 }
 0x63b   : > { %4041 = vmatprep.mubr.msk.bf16.mxu0 %vm4437_vm1, %v4435_v46  ;;  %4026 = vmatpush3.bf16.msra.mxu0 %v4210_v2 }
 0x63c   : > { %4027 = vmatprep.subr.bf16.mxu0 %v4435_v46 }
 0x63d   : > { %v4315_v63 = vpop.eup %4314 }
 0x63e   : > { %v2161_v0 = vmul.f32 %v4315_v63, %v4938_v38  ;;  %v4214_v38 = vld [vmem:[%s4651_s23 + $0x20] sm:$0xff]  }
 0x63f   : > { %4028 = vmatpush3.bf16.msra.mxu0 %v4211_v36 }
 0x640   : > { %v2165_v1 = vpack.c.bf16 %v2161_v0, %v2161_v0  ;;  %4029 = vmatprep.subr.bf16.mxu0 %v4435_v46 }
 0x642   : > { %4022 = vmatmul.mubr.msk.bf16.vlgmr.msra.gmra.mrb[24].mxu1 %vm2117_vm3, %v2165_v1 }
 0x643   : > { %2891 = vmatprep.mubr.bf16.mxu1 %v4436_v4  ;;  %4030 = vmatpush3.bf16.msra.mxu0 %v4212_v3 }
 0x644   : > { %4031 = vmatprep.subr.bf16.mxu0 %v4435_v46 }
 0x647   : > { %4032 = vmatpush3.bf16.msra.mxu0 %v4213_v5 }
 0x648   : > { %4033 = vmatprep.subr.bf16.mxu0 %v4435_v46 }
 0x64b   : > { %4034 = vmatpush3.bf16.msra.mxu0 %v4214_v38 }
 0x64c   : > { %4035 = vmatprep.subr.bf16.mxu0 %v4435_v46 }
 0x64f   : > { %4036 = vmatpush3.bf16.msra.mxu0 %v4215_v6 }
 0x650   : > { %4037 = vmatprep.subr.bf16.mxu0 %v4435_v46 }
 0x653   : > { %4038 = vmatpush3.bf16.msra.mxu0 %v4216_v43  ;;  %v4239_v43 = vld [vmem:[%s4675_s4 + $0x68] ss:$16 sps:$4 sm:$0xff]  }
 0x654   : > { %4039 = vmatprep.subr.bf16.mxu0 %v4435_v46 }
 0x657   : > { %4040 = vmatpush3.bf16.msra.mxu0 %v4217_v23  ;;  %v4262_v23 = vld [vmem:[%s4675_s4 + $0xe4] ss:$16 sps:$4 sm:$0xff]  }
 0x6f0   : > { %v2207_v7 = vpop.f32.mrb[4].mxu0 }
 0x6f1   : > { %v4005_v8 = vpop.f32.mrb[5].mxu0 }
 0x6f2   : > { %v2210_v9 = vpop.f32.mrb[6].mxu0  ;;  %v2253_v10 = vpop.f32.mrb[20].mxu1 }
 0x6f3   : > { %v4006_v11 = vpop.f32.mrb[7].mxu0  ;;  %v4011_v12 = vpop.f32.mrb[21].mxu1  ;;  %v3728_v9 = vld [vmem:[%s5282_s30] ss:$0 sm:$0xff] }
 0x6f4   : > { %v2256_v14 = vpop.f32.mrb[22].mxu1 }
 0x6f5   : > { %v4012_v15 = vpop.f32.mrb[23].mxu1 }
 0x6f6   : > { %v4326_v15 = vld [vmem:[#allocation2] sm:$0xff] }
 0x70d   : > { %v2299_v16 = vpop.f32.mrb[8].mxu0 }
 0x70e   : > { %v2351_v17 = vcombine.low %v2207_v7, %v2299_v16  ;;  %v2352_v18 = vcombine.high %v2207_v7, %v2299_v16  ;;  %v4017_v19 = vpop.f32.mrb[9].mxu0 }
 0x70f   : > { %v2302_v20 = vpop.f32.mrb[10].mxu0  ;;  %v4221_v19 = vld [vmem:[%s4675_s4 + $0x8] ss:$16 sps:$4 sm:$0xff]  }
 0x710   : > { %v4018_v24 = vpop.f32.mrb[11].mxu0  ;;  %v2359_v32 = vrot.slane %v2351_v17, %v4849_v45  ;;  %v2366_v33 = vrot.slane %v2352_v18, %v4849_v45  ;;  %v4220_v18 = vld [vmem:[%s4675_s4 + $0x4] ss:$16 sps:$4 sm:$0xff]   ;;  %v4223_v20 = vld [vmem:[%s4675_s4 + $0xc] ss:$16 sps:$4 sm:$0xff]  }
 0x711   : > { %v4226_v24 = vld [vmem:[%s4675_s4 + $0x24] ss:$16 sps:$4 sm:$0xff]   ;;  %2859 = vmatprep.subr.bf16.mxu1 %v4220_v18  ;;  %2900 = vmatprep.subr.bf16.mxu0 %v4223_v20  ;;  %v4280_v18 = vld [vmem:[%s4685_s0 + $0x18] sm:$0xff]  }
 0x712   : > { %v4282_v20 = vld [vmem:[%s4685_s0 + $0x60] sm:$0xff]  }
 0x715   : > { %v2345_v26 = vpop.f32.mrb[24].mxu1 }
 0x716   : > { %v2367_v29 = vcombine.low %v2253_v10, %v2345_v26  ;;  %v2368_v27 = vcombine.high %v2253_v10, %v2345_v26  ;;  %v4023_v30 = vpop.f32.mrb[25].mxu1  ;;  %v4229_v26 = vld [vmem:[%s4675_s4 + $0x2c] ss:$16 sps:$4 sm:$0xff]  }
 0x717   : > { %v2348_v31 = vpop.f32.mrb[26].mxu1  ;;  %v4232_v30 = vld [vmem:[%s4675_s4 + $0x44] ss:$16 sps:$4 sm:$0xff]  }
 0x718   : > { %v2375_v34 = vrot.slane %v2367_v29, %v4849_v45  ;;  %v2382_v35 = vrot.slane %v2368_v27, %v4849_v45  ;;  %v4024_v37 = vpop.f32.mrb[27].mxu1  ;;  %v4224_v29 = vld [vmem:[%s4675_s4 + $0x20] ss:$16 sps:$4 sm:$0xff]   ;;  %v4227_v27 = vld [vmem:[%s4675_s4 + $0x28] ss:$16 sps:$4 sm:$0xff]  }
 0x719   : > { %v4235_v31 = vld [vmem:[%s4675_s4 + $0x4c] ss:$16 sps:$4 sm:$0xff]  }
 0x71a   : > { %v2383_v39 = vcombine.low %v2359_v32, %v2375_v34  ;;  %v2384_v40 = vcombine.high %v2359_v32, %v2375_v34  ;;  %v2399_v41 = vcombine.low %v2366_v33, %v2382_v35  ;;  %v2400_v42 = vcombine.high %v2366_v33, %v2382_v35  ;;  %v4230_v32 = vld [vmem:[%s4675_s4 + $0x40] ss:$16 sps:$4 sm:$0xff]   ;;  %v4233_v33 = vld [vmem:[%s4675_s4 + $0x48] ss:$16 sps:$4 sm:$0xff]  }
 0x71c   : > { %v2391_v44 = vrot.slane %v2383_v39, %v4852_v49  ;;  %v2398_v47 = vrot.slane %v2384_v40, %v4852_v49  ;;  %v2407_v48 = vrot.slane %v2399_v41, %v4852_v49  ;;  %v2414_v50 = vrot.slane %v2400_v42, %v4852_v49  ;;  %v4238_v40 = vld [vmem:[%s4675_s4 + $0x64] ss:$16 sps:$4 sm:$0xff]   ;;  %v4241_v41 = vld [vmem:[%s4675_s4 + $0x6c] ss:$16 sps:$4 sm:$0xff]   ;;  %v4236_v42 = vld [vmem:[%s4675_s4 + $0x60] ss:$16 sps:$4 sm:$0xff]  }
 0x71e   : > { %v2419_v51 = vcombine.low %v2391_v44, %v2398_v47  ;;  %v3726_v52 = vcombine.high %v2391_v44, %v2398_v47  ;;  %v2435_v53 = vcombine.low %v2407_v48, %v2414_v50  ;;  %v3727_v54 = vcombine.high %v2407_v48, %v2414_v50  ;;  %v4244_v44 = vld [vmem:[%s4675_s4 + $0x84] ss:$16 sps:$4 sm:$0xff]   ;;  %v4247_v47 = vld [vmem:[%s4675_s4 + $0x8c] ss:$16 sps:$4 sm:$0xff]   ;;  %v4242_v48 = vld [vmem:[%s4675_s4 + $0x80] ss:$16 sps:$4 sm:$0xff]  }
 0x71f   : > { %v4245_v50 = vld [vmem:[%s4675_s4 + $0x88] ss:$16 sps:$4 sm:$0xff]  }
 0x720   : > { %v2426_v55 = vrot.slane %v2419_v51, %v4849_v45  ;;  %v2434_v28 = vrot.slane %v3726_v52, %v4849_v45  ;;  %v2442_v56 = vrot.slane %v2435_v53, %v4849_v45  ;;  %v2450_v57 = vrot.slane %v3727_v54, %v4849_v45  ;;  %v4250_v51 = vld [vmem:[%s4675_s4 + $0xa4] ss:$16 sps:$4 sm:$0xff]   ;;  %v4253_v52 = vld [vmem:[%s4675_s4 + $0xac] ss:$16 sps:$4 sm:$0xff]   ;;  %v4248_v53 = vld [vmem:[%s4675_s4 + $0xa0] ss:$16 sps:$4 sm:$0xff]  }
 0x721   : > { %v4251_v54 = vld [vmem:[%s4675_s4 + $0xa8] ss:$16 sps:$4 sm:$0xff]  }
 0x722   : > { %v2452_v58 = vcombine.high %v2426_v55, %v2434_v28  ;;  %v2468_v59 = vcombine.high %v2442_v56, %v2450_v57  ;;  %v2451_v60 = vcombine.low %v2426_v55, %v2434_v28  ;;  %v2467_v61 = vcombine.low %v2442_v56, %v2450_v57  ;;  %v4254_v55 = vld [vmem:[%s4675_s4 + $0xc0] ss:$16 sps:$4 sm:$0xff]   ;;  %v4256_v28 = vld [vmem:[%s4675_s4 + $0xc4] ss:$16 sps:$4 sm:$0xff]   ;;  %v4257_v56 = vld [vmem:[%s4675_s4 + $0xc8] ss:$16 sps:$4 sm:$0xff]  }
 0x723   : > { %v4259_v57 = vld [vmem:[%s4675_s4 + $0xcc] ss:$16 sps:$4 sm:$0xff]  }
 0x724   : > { %v2466_v62 = vrot.slane %v2452_v58, %v4852_v49  ;;  %v2482_v63 = vrot.slane %v2468_v59, %v4852_v49  ;;  %v2459_v46 = vrot.slane %v2451_v60, %v4852_v49  ;;  %v2475_v0 = vrot.slane %v2467_v61, %v4852_v49  ;;  %v4265_v58 = vld [vmem:[%s4675_s4 + $0xec] ss:$16 sps:$4 sm:$0xff]   ;;  %v4260_v59 = vld [vmem:[%s4675_s4 + $0xe0] ss:$16 sps:$4 sm:$0xff]   ;;  %v4263_v60 = vld [vmem:[%s4675_s4 + $0xe8] ss:$16 sps:$4 sm:$0xff]  }
 0x725   : > { %v4266_v61 = vld [vmem:[%s4685_s0 + $0x40] sm:$0xff]  }
 0x726   : > { %v2485_v1 = vcombine.low %v2466_v62, %v2482_v63  ;;  %v2484_v2 = vcombine.high %v2459_v46, %v2475_v0  ;;  %v2486_v36 = vcombine.high %v2466_v62, %v2482_v63  ;;  %v2483_v3 = vcombine.low %v2459_v46, %v2475_v0  ;;  %v4267_v62 = vld [vmem:[%s4685_s0 + $0xc0] sm:$0xff]  }
 0x728   : > { %2492 = vrot.lane.b32.xlu1 %v2485_v1, %s4440_s3  ;;  %2488 = vrot.lane.b32.xlu0 %v2484_v2, %s4438_s20  ;;  %v3737_v2 = vld [vmem:[%s5283_s2] ss:$0 sm:$0xff]  ;;  %s5290_s3 = sld [smem:[#allocation29_spill]] (!%p3804_p1) }
 0x72c   : > { %2496 = vrot.lane.b32.xlu0 %v2486_v36, %s4439_s21 }
 0x79a   : > { %v2489_v45 = vpop.permute.xlu0 %2488  ;;  %v2493_v5 = vpop.permute.xlu1 %2492 }
 0x79b   : > { %v2499_v38 = vsel %vm1932_vm2, %v2483_v3, %v2489_v45  ;;  %v3738_v3 = vld [vmem:[%s5284_s8] ss:$0 sm:$0xff] }
 0x79c   : > { %v2501_v49 = vsel %vm2500_vm5, %v2499_v38, %v2493_v5  ;;  %v4268_v38 = vld [vmem:[%s4685_s0] sm:$0xff]  }
 0x79e   : > { %v2497_v6 = vpop.permute.xlu0 %2496 }
 0x79f   : > { %v2503_v7 = vsel %vm2502_vm6, %v2501_v49, %v2497_v6  ;;  %v4269_v6 = vld [vmem:[%s4685_s0 + $0x80] sm:$0xff]  }
 0x7a0   : > { %v2504_v8 = vpack.c.bf16 %v2503_v7, %v2503_v7  ;;  %v4270_v7 = vld [vmem:[%s4685_s0 + $0x48] sm:$0xff]  }
 0x7a2   : > { %4042 = vmatmul.mubr.bf16.vlgmr.msra.gmra.mrb[12].mxu0 %v2504_v8  ;;  %v4271_v8 = vld [vmem:[%s4685_s0 + $0xc8] sm:$0xff]  }
 0x7a3   : > { %2932 = vmatprep.mubr.bf16.mxu0 %v4436_v4  ;;  %v4218_v4 = vld [vmem:[%s4675_s4] ss:$16 sps:$4 sm:$0xff]   ;;  %2901 = vmatpush1.bf16.msra.mxu0 %v4221_v19  ;;  %v4281_v19 = vld [vmem:[%s4685_s0 + $0x98] sm:$0xff]  }
 0x7a4   : > { %2860 = vmatpush1.bf16.msra.mxu1 %v4218_v4  ;;  %2902 = vmatprep.subr.bf16.mxu0 %v4229_v26  ;;  %v4279_v4 = vld [vmem:[%s4685_s0 + $0xd8] sm:$0xff]   ;;  %v4284_v26 = vld [vmem:[%s4685_s0 + $0x20] sm:$0xff]  }
 0x7a5   : > { %2861 = vmatprep.subr.bf16.mxu1 %v4226_v24  ;;  %v4283_v24 = vld [vmem:[%s4685_s0 + $0xe0] sm:$0xff]  }
 0x7a7   : > { %2903 = vmatpush1.bf16.msra.mxu0 %v4227_v27  ;;  %v4286_v27 = vld [vmem:[%s4685_s0 + $0x68] sm:$0xff]  }
 0x7a8   : > { %2862 = vmatpush1.bf16.msra.mxu1 %v4224_v29  ;;  %2904 = vmatprep.subr.bf16.mxu0 %v4235_v31  ;;  %v4285_v29 = vld [vmem:[%s4685_s0 + $0xa0] sm:$0xff]   ;;  %v4288_v31 = vld [vmem:[%s4685_s0 + $0x28] sm:$0xff]  }
 0x7a9   : > { %2863 = vmatprep.subr.bf16.mxu1 %v4232_v30  ;;  %v4287_v30 = vld [vmem:[%s4685_s0 + $0xe8] sm:$0xff]  }
 0x7ab   : > { %2905 = vmatpush1.bf16.msra.mxu0 %v4233_v33  ;;  %v4290_v33 = vld [vmem:[%s4685_s0 + $0x70] sm:$0xff]  }
 0x7ac   : > { %2864 = vmatpush1.bf16.msra.mxu1 %v4230_v32  ;;  %2906 = vmatprep.subr.bf16.mxu0 %v4241_v41  ;;  %v4289_v32 = vld [vmem:[%s4685_s0 + $0xa8] sm:$0xff]   ;;  %v4296_v41 = vld [vmem:[%s4685_s0 + $0x38] sm:$0xff]  }
 0x7ad   : > { %2865 = vmatprep.subr.bf16.mxu1 %v4238_v40  ;;  %v4295_v40 = vld [vmem:[%s4685_s0 + $0xf8] sm:$0xff]  }
 0x7af   : > { %2907 = vmatpush1.bf16.msra.mxu0 %v4239_v43  ;;  %v2677_v43 = vld [vmem:[%s4680_s26] sm:$0xf] }
 0x7b0   : > { %2866 = vmatpush1.bf16.msra.mxu1 %v4236_v42  ;;  %2908 = vmatprep.subr.bf16.mxu0 %v4247_v47  ;;  %v4297_v42 = vld [vmem:[%s4685_s0 + $0xb8] sm:$0xff]   ;;  %v2682_v47 = vrot.slane %v2677_v43, %v1203_v25 }
 0x7b1   : > { %2867 = vmatprep.subr.bf16.mxu1 %v4244_v44  ;;  %v2693_v44 = vsub.s32 3, %v4827_v21 }
 0x7b3   : > { %2909 = vmatpush1.bf16.msra.mxu0 %v4245_v50  ;;  %v2686_v50 = vrot.slane %v2677_v43, %v1207_v22 }
 0x7b4   : > { %2868 = vmatpush1.bf16.msra.mxu1 %v4242_v48  ;;  %2910 = vmatprep.subr.bf16.mxu0 %v4253_v52  ;;  %v2690_v48 = vrot.slane %v2677_v43, %v1211_v13 }
 0x7b5   : > { %2869 = vmatprep.subr.bf16.mxu1 %v4250_v51  ;;  %v2694_v51 = vrot.slane %v2677_v43, %v2693_v44  ;;  %v4327_v43 = vld [vmem:[%s5286_s24] sm:$0xff] (!%p3804_p1)   ;;  %v4443_v44 = vmov (!%p3804_p1), 0.0  }
 0x7b7   : > { %2911 = vmatpush1.bf16.msra.mxu0 %v4251_v54 }
 0x7b8   : > { %2870 = vmatpush1.bf16.msra.mxu1 %v4248_v53  ;;  %2912 = vmatprep.subr.bf16.mxu0 %v4259_v57 }
 0x7b9   : > { %2871 = vmatprep.subr.bf16.mxu1 %v4256_v28 }
 0x7bb   : > { %2913 = vmatpush1.bf16.msra.mxu0 %v4257_v56 }
 0x7bc   : > { %2872 = vmatpush1.bf16.msra.mxu1 %v4254_v55  ;;  %2914 = vmatprep.subr.bf16.mxu0 %v4265_v58 }
 0x7bd   : > { %2873 = vmatprep.subr.bf16.mxu1 %v4262_v23 }
 0x7bf   : > { %2915 = vmatpush1.bf16.msra.mxu0 %v4263_v60 }
 0x7c0   : > { %2874 = vmatpush1.bf16.msra.mxu1 %v4260_v59  ;;  %3906 = vmatprep.subr.bf16.mxu0 %v4267_v62 }
 0x7c1   : > { %3884 = vmatprep.subr.bf16.mxu1 %v4266_v61 }
 0x875   : > { %v2610_v10 = vpop.f32.mrb[12].mxu0 }
 0x876   : > { %v2611_v11 = vadd.f32 %v3728_v9, %v2610_v10  ;;  %v4043_v12 = vpop.f32.mrb[13].mxu0  ;;  %v4272_v9 = vld [vmem:[%s4685_s0 + $0x8] sm:$0xff]  }
 0x877   : > { %v2613_v14 = vpop.f32.mrb[14].mxu0  ;;  %v4273_v10 = vld [vmem:[%s4685_s0 + $0x88] sm:$0xff]   ;;  %v4275_v12 = vld [vmem:[%s4685_s0 + $0xd0] sm:$0xff]  }
 0x878   : > { %v5025_v16 = vadd.f32 %v4326_v15, %v2611_v11  ;;  %v4044_v17 = vpop.f32.mrb[15].mxu0  ;;  %v4274_v11 = vld [vmem:[%s4685_s0 + $0x50] sm:$0xff]  }
 0x879   : > { %v4276_v14 = vld [vmem:[%s4685_s0 + $0x10] sm:$0xff]   ;;  %v4278_v17 = vld [vmem:[%s4685_s0 + $0x58] sm:$0xff]  }
 0x87a   : > { %2619 = vadd.xlane.f32.xlu1 %v5025_v16  ;;  %v4277_v15 = vld [vmem:[%s4685_s0 + $0x90] sm:$0xff]  }
 0x907   : > { %v2620_v34 = vpop.xlane.xlu1 %2619 }
 0x908   : > { %v2621_v35 = vmul.f32 0.0078125, %v2620_v34  ;;  %v4291_v34 = vld [vmem:[%s4685_s0 + $0xf0] sm:$0xff]  }
 0x90a   : > { %v2622_v37 = vsub.f32 %v5025_v16, %v2621_v35  ;;  %v4292_v35 = vld [vmem:[%s4685_s0 + $0x30] sm:$0xff]  }
 0x90c   : > { %v2623_v39 = vmul.f32 %v2622_v37, %v2622_v37 }
 0x90e   : > { %2624 = vadd.xlane.f32.xlu0 %v2623_v39  ;;  %v4294_v39 = vld [vmem:[%s4685_s0 + $0x78] sm:$0xff]  }
 0x99b   : > { %v2625_v63 = vpop.xlane.xlu0 %2624 }
 0x99c   : > { %v2626_v46 = vmul.f32 0.0078125, %v2625_v63 }
 0x99e   : > { %v2627_v0 = vadd.f32 1e-05, %v2626_v46 }
 0x9a0   : > { %4316 = vrsqrt.f32 %v2627_v0 }
 0x9aa   : > { %v4317_v1 = vpop.eup %4316 }
 0x9ab   : > { %v2629_v36 = vmul.f32 %v4317_v1, %v2622_v37  ;;  %v4293_v37 = vld [vmem:[%s4685_s0 + $0xb0] sm:$0xff]  }
 0x9ad   : > { %v2636_v45 = vmul.f32 %v3737_v2, %v2629_v36 }
 0x9af   : > { %v2643_v5 = vadd.f32 %v3738_v3, %v2636_v45 }
 0x9b1   : > { %v2644_v49 = vpack.c.bf16 %v2643_v5, %v2643_v5 }
 0x9b3   : > { %2892 = vmatmul.mubr.bf16.vlgmr.msra.gmra.mrb[28].mxu1 %v2644_v49  ;;  %2933 = vmatmul.mubr.bf16.vlgmr.msra.gmra.mrb[16].mxu0 %v2644_v49 }
 0x9b4   : > { %3885 = vmatpush3.bf16.msra.mxu1 %v4268_v38  ;;  %3907 = vmatpush3.bf16.msra.mxu0 %v4269_v6 }
 0x9b5   : > { %3886 = vmatprep.subr.bf16.mxu1 %v4270_v7  ;;  %3908 = vmatprep.subr.bf16.mxu0 %v4271_v8 }
 0x9b8   : > { %3887 = vmatpush3.bf16.msra.mxu1 %v4272_v9  ;;  %3909 = vmatpush3.bf16.msra.mxu0 %v4273_v10 }
 0x9b9   : > { %3888 = vmatprep.subr.bf16.mxu1 %v4274_v11  ;;  %3910 = vmatprep.subr.bf16.mxu0 %v4275_v12 }
 0x9bc   : > { %3889 = vmatpush3.bf16.msra.mxu1 %v4276_v14  ;;  %3911 = vmatpush3.bf16.msra.mxu0 %v4277_v15 }
 0x9bd   : > { %3890 = vmatprep.subr.bf16.mxu1 %v4278_v17  ;;  %3912 = vmatprep.subr.bf16.mxu0 %v4279_v4  ;;  %v3771_v4 = vld [vmem:[%s836_s25] ss:$0 sm:$0xff] }
 0x9c0   : > { %3891 = vmatpush3.bf16.msra.mxu1 %v4280_v18  ;;  %3913 = vmatpush3.bf16.msra.mxu0 %v4281_v19 }
 0x9c1   : > { %3892 = vmatprep.subr.bf16.mxu1 %v4282_v20  ;;  %3914 = vmatprep.subr.bf16.mxu0 %v4283_v24 }
 0x9c4   : > { %3893 = vmatpush3.bf16.msra.mxu1 %v4284_v26  ;;  %3915 = vmatpush3.bf16.msra.mxu0 %v4285_v29 }
 0x9c5   : > { %3894 = vmatprep.subr.bf16.mxu1 %v4286_v27  ;;  %3916 = vmatprep.subr.bf16.mxu0 %v4287_v30 }
 0x9c8   : > { %3895 = vmatpush3.bf16.msra.mxu1 %v4288_v31  ;;  %3917 = vmatpush3.bf16.msra.mxu0 %v4289_v32 }
 0x9c9   : > { %3896 = vmatprep.subr.bf16.mxu1 %v4290_v33  ;;  %3918 = vmatprep.subr.bf16.mxu0 %v4291_v34 }
 0x9cc   : > { %3897 = vmatpush3.bf16.msra.mxu1 %v4292_v35  ;;  %3919 = vmatpush3.bf16.msra.mxu0 %v4293_v37 }
 0x9cd   : > { %3898 = vmatprep.subr.bf16.mxu1 %v4294_v39  ;;  %3920 = vmatprep.subr.bf16.mxu0 %v4295_v40 }
 0x9d0   : > { %3899 = vmatpush3.bf16.msra.mxu1 %v4296_v41  ;;  %3921 = vmatpush3.bf16.msra.mxu0 %v4297_v42 }
 0x9d1   : > { %4045 = vmatprep.subr.bf16.mxu0 (!%p3804_p1), %v4443_v44 }
 0xa86   : > { %v2893_v52 = vpop.f32.mrb[28].mxu1  ;;  %v2934_v53 = vpop.f32.mrb[16].mxu0 }
 0xa87   : > { %v2894_v54 = vadd.f32 %v2893_v52, %v2682_v47  ;;  %v2935_v55 = vadd.f32 %v2934_v53, %v2690_v48  ;;  %v2895_v28 = vpop.f32.mrb[29].mxu1  ;;  %v2936_v56 = vpop.f32.mrb[17].mxu0  ;;  %v4329_v52 = vld [vmem:[%s5287_s16 + $0x10] sm:$0xff] (!%p3804_p1)   ;;  %v4330_v53 = vld [vmem:[%s5287_s16 + $0x18] sm:$0xff] (!%p3804_p1)  }
 0xa88   : > { %v2896_v57 = vadd.f32 %v2895_v28, %v2686_v50  ;;  %v2937_v23 = vadd.f32 %v2936_v56, %v2694_v51  ;;  %v2897_v58 = vpop.f32.mrb[30].mxu1  ;;  %v2938_v59 = vpop.f32.mrb[18].mxu0  ;;  %v4333_v28 = vld [vmem:[%s5287_s16 + $0x30] sm:$0xff] (!%p3804_p1)   ;;  %v4334_v56 = vld [vmem:[%s5287_s16 + $0x38] sm:$0xff] (!%p3804_p1)  }
 0xa89   : > { %v2945_v60 = vmul.f32 0.70710677, %v2894_v54  ;;  %v2947_v61 = vmul.f32 0.70710677, %v2935_v55  ;;  %v2898_v13 = vpop.f32.mrb[31].mxu1  ;;  %v2939_v63 = vpop.f32.mrb[19].mxu0 }
 0xa8a   : > { %v2946_v25 = vmul.f32 0.70710677, %v2896_v57  ;;  %v2948_v62 = vmul.f32 0.70710677, %v2937_v23  ;;  %v2941_v1 = vmul.f32 0.5, %v2894_v54  ;;  %v2943_v3 = vmul.f32 0.5, %v2935_v55 }
 0xa8b   : > { %4318 = verf.f32 %v2945_v60  ;;  %v2942_v45 = vmul.f32 0.5, %v2896_v57  ;;  %v2944_v6 = vmul.f32 0.5, %v2937_v23  ;;  %v4331_v54 = vld [vmem:[%s5287_s16 + $0x20] sm:$0xff] (!%p3804_p1)   ;;  %v4332_v55 = vld [vmem:[%s5287_s16 + $0x28] sm:$0xff] (!%p3804_p1)  }
 0xa8c   : > { %4320 = verf.f32 %v2947_v61  ;;  %v3322_v60 = vld [vmem:[%s5288_s1] sm:$0x1] (!%p3804_p1) }
 0xa8d   : > { %4322 = verf.f32 %v2946_v25  ;;  %v3323_v25 = vld [vmem:[%s5289_s27] sm:$0x1] (!%p3804_p1) }
 0xa8e   : > { %4324 = verf.f32 %v2948_v62 }
 0xa95   : > { %v4319_v21 = vpop.eup %4318 }
 0xa96   : > { %v4321_v22 = vpop.eup %4320  ;;  %v2953_v46 = vadd.f32 1.0, %v4319_v21  ;;  %v3354_v21 = vld [vmem:[%s5290_s3] sm:$0x1] (!%p3804_p1) }
 0xa97   : > { %v4323_v0 = vpop.eup %4322  ;;  %v2955_v2 = vadd.f32 1.0, %v4321_v22 }
 0xa98   : > { %v4325_v36 = vpop.eup %4324  ;;  %v2954_v5 = vadd.f32 1.0, %v4323_v0  ;;  %v2957_v38 = vmul.f32 %v2953_v46, %v2941_v1 }
 0xa99   : > { %v2956_v49 = vadd.f32 1.0, %v4325_v36  ;;  %v2959_v7 = vmul.f32 %v2955_v2, %v2943_v3 }
 0xa9a   : > { %v2958_v8 = vmul.f32 %v2954_v5, %v2942_v45  ;;  %v2961_v11 = vpack.c.bf16 %v2957_v38, %v2957_v38 }
 0xa9b   : > { %v2960_v9 = vmul.f32 %v2956_v49, %v2944_v6  ;;  %v2963_v14 = vpack.c.bf16 %v2959_v7, %v2959_v7 }
 0xa9c   : > { %v2962_v10 = vpack.c.bf16 %v2958_v8, %v2958_v8 }
 0xa9d   : > { %v2964_v12 = vpack.c.bf16 %v2960_v9, %v2960_v9 }
 0xa9e   : > { %3260 = vmatprep.mubr.bf16.mxu1 %v2962_v10 }
 0xa9f   : > { %3300 = vmatprep.mubr.bf16.mxu0 %v2964_v12  ;;  %3261 = vmatmul.mubr.bf16.vlgmr.msra.gmra.mrb[32].mxu1 %v2961_v11 }
 0xaa0   : > { %3301 = vmatmul.mubr.bf16.vlgmr.msra.gmra.mrb[20].mxu0 %v2963_v14 }
 0xaa1   : > { %4046 = vmatpush3.bf16.msra.mxu0 (!%p3804_p1), %v4327_v43  ;;  %4061 = vmatprep.mubr.msk.bf16.mxu0 (!%p3804_p1), %vm4444_vm7, %v4443_v44 }
 0xaa2   : > { %4047 = vmatprep.subr.bf16.mxu0 (!%p3804_p1), %v4443_v44 }
 0xb72   : > { %v3900_v15 = vpop.f32.mrb[32].mxu1 }
 0xb73   : > { %v3922_v17 = vpop.f32.mrb[20].mxu0  ;;  %v3901_v18 = vpop.f32.mrb[33].mxu1 }
 0xb74   : > { %v3902_v19 = vadd.f32 %v3901_v18, %v3900_v15  ;;  %v3923_v20 = vpop.f32.mrb[21].mxu0  ;;  %v3903_v24 = vpop.f32.mrb[34].mxu1 }
 0xb75   : > { %v3924_v26 = vadd.f32 %v3923_v20, %v3922_v17  ;;  %v3925_v29 = vpop.f32.mrb[22].mxu0  ;;  %v3904_v27 = vpop.f32.mrb[35].mxu1 }
 0xb76   : > { %v3263_v30 = vadd.f32 %v3902_v19, %v3771_v4  ;;  %v3926_v31 = vpop.f32.mrb[23].mxu0  ;;  %3313 = sbr.rel (%p3804_p1) target bundleno = 3482 (0xd9a), region = 108 }
 0xb78   : > { %v3303_v32 = vadd.f32 %v3924_v26, %v3263_v30 }
 0xb7a   : > { %v3308_v33 = vadd.f32 %v3303_v32, %v5025_v16  ;;  %v4328_v16 = vld [vmem:[%s5287_s16 + $0x8] sm:$0xff] (!%p3804_p1)  }
 0xb7b   : > { %4048 = vmatpush3.bf16.msra.mxu0 (!%p3804_p1), %v4328_v16 }
 0xb7c   : > { %3309 = vst [vmem:[#allocation2] sm:$0xff] %v3308_v33  ;;  %v3314_v34 = vrot.slane (!%p3804_p1), %v3308_v33, 4  ;;  %4049 = vmatprep.subr.bf16.mxu0 (!%p3804_p1), %v4443_v44 }
 0xb7e   : > { %v3315_v35 = vadd.f32 %v3314_v34, %v3308_v33 }
 0xb7f   : > { %4050 = vmatpush3.bf16.msra.mxu0 %v4329_v52 }
 0xb80   : > { %v3316_v37 = vrot.slane %v3315_v35, 2  ;;  %4051 = vmatprep.subr.bf16.mxu0 %v4443_v44 }
 0xb82   : > { %v3317_v39 = vadd.f32 %v3316_v37, %v3315_v35 }
 0xb83   : > { %4052 = vmatpush3.bf16.msra.mxu0 %v4330_v53 }
 0xb84   : > { %v3318_v40 = vrot.slane %v3317_v39, 1  ;;  %4053 = vmatprep.subr.bf16.mxu0 %v4443_v44 }
 0xb86   : > { %v3319_v41 = vadd.f32 %v3318_v40, %v3317_v39 }
 0xb87   : > { %4054 = vmatpush3.bf16.msra.mxu0 %v4331_v54 }
 0xb88   : > { %v3321_v42 = vmul.f32 0.125, %v3319_v41  ;;  %4055 = vmatprep.subr.bf16.mxu0 %v4443_v44 }
 0xb8a   : > { %3324 = vadd.xlane.f32.xlu0 %v3321_v42 }
 0xb8b   : > { %4056 = vmatpush3.bf16.msra.mxu0 %v4332_v55 }
 0xb8c   : > { %4057 = vmatprep.subr.bf16.mxu0 %v4443_v44 }
 0xb8f   : > { %4058 = vmatpush3.bf16.msra.mxu0 %v4333_v28 }
 0xb90   : > { %4059 = vmatprep.subr.bf16.mxu0 %v4443_v44 }
 0xb93   : > { %4060 = vmatpush3.bf16.msra.mxu0 %v4334_v56 }
 0xc17   : > { %v3325_v47 = vpop.xlane.xlu0 %3324 }
 0xc18   : > { %v3326_v48 = vmul.f32 0.0078125, %v3325_v47 }
 0xc1a   : > { %v3327_v50 = vsub.f32 %v3321_v42, %v3326_v48 }
 0xc1c   : > { %v3328_v51 = vmul.f32 %v3327_v50, %v3327_v50 }
 0xc1e   : > { %3329 = vadd.xlane.f32.xlu0 %v3328_v51 }
 0xcab   : > { %v3330_v57 = vpop.xlane.xlu0 %3329 }
 0xcac   : > { %v3331_v23 = vmul.f32 0.0078125, %v3330_v57 }
 0xcae   : > { %v3332_v58 = vadd.f32 1e-05, %v3331_v23 }
 0xcb0   : > { %4335 = vrsqrt.f32 %v3332_v58 }
 0xcba   : > { %v4336_v59 = vpop.eup %4335 }
 0xcbb   : > { %v3334_v61 = vmul.f32 %v4336_v59, %v3327_v50 }
 0xcbd   : > { %v3335_v62 = vmul.f32 %v3334_v61, %v3322_v60 }
 0xcbf   : > { %v3336_v13 = vadd.f32 %v3335_v62, %v3323_v25 }
 0xcc1   : > { %v3337_v63 = vpack.c.bf16 %v3336_v13, %v3336_v13 }
 0xcc3   : > { %4062 = vmatmul.mubr.bf16.vlgmr.msra.gmra.mrb[0].mxu0 %v3337_v63 }
 0xd96   : > { %v3437_v22 = vpop.f32.mrb[0].mxu0 }
 0xd97   : > { %v3438_v46 = vadd.f32 %v3437_v22, %v3354_v21  ;;  %v4063_v0 = vpop.f32.mrb[1].mxu0 }
 0xd98   : > { %v3440_v1 = vpop.f32.mrb[2].mxu0 }
 0xd99   : > { %3443 = vst [vmem:[%s4693_s18] sm:$0x1] %v3438_v46  ;;  %v4064_v2 = vpop.f32.mrb[3].mxu0 }
 0xd9a PF: > { %s5291_s23 = sld [smem:[#allocation9_spill]]  ;;  %s5293_s2 = sld [smem:[#allocation30_spill]] }
 0xd9b   : > { %s3457_s8 = sshll.u32 %s4693_s18, 4  ;;  %s5295_s26 = sand.u32 1, %s4407_s22   ;;  %s3458_s8 = int_to_ptr.vmem [resolvable:$true] %s3457_s8 }
 0xd9c   : > { %s3445_s0 = scalar_lea.sflag [#allocation4], %s5295_s26  ;;  %s4337_s29 = scalar_lea.vmem %s3458_s8, 16 }
 0xd9d   : > { %p4338_p2 = scmp.ne.s32.totalorder %s3458_s8, %s4337_s29  ;;  %s4445_s1 = smov [#allocation3]  }
 0xd9e   : > { %s4341_s25 = sshll.u32 %s4445_s1, 4  ;;  %s4342_s25 = int_to_ptr.vmem [resolvable:$false] %s4341_s25 }
 0xd9f   : > { %p4339_p4 = pnand %p4338_p2, %p4600_p3  ;;  %s4343_s24 = scalar_lea.vmem %s4342_s25, 32 }
 0xda0   : > { %s3813_s30 = sshll.u32 %s5291_s23, 4  ;;  %s5294_s28 = smov %s5293_s2 }
 0xda1   : > { %s5156_s19 = scalar_lea.hbm %s5293_s2, %s3813_s30  ;;  %p4340_p5 = pneg %p4339_p4 }
 0xda2   : > { %p4344_p6 = scmp.lt.s32.totalorder %s3458_s8, %s4342_s25  ;;  %p4345_p7 = scmp.lt.s32.totalorder %s4343_s24, %s4337_s29 }
 0xda4   : > { %p4346_p8 = por %p4345_p7, %p4344_p6 }
 0xda6   : > { %p4347_p10 = pnand %p4346_p8, %p4340_p5 }
 0xda8   : > { %4350 = shalt.err (!%p4347_p10)
}
 0xda9   : > { %s4351_s18 = scalar_lea.hbm %s5156_s19, 16  ;;  %s4355_s21 = scalar_lea.hbm %s5294_s28, 32 }
 0xdaa   : > { %p4352_p11 = scmp.ne.s32.totalorder %s5156_s19, %s4351_s18  ;;  %p4356_p0 = scmp.lt.u32.totalorder %s5156_s19, %s5294_s28 }
 0xdab   : > { %p4357_p1 = scmp.lt.u32.totalorder %s4355_s21, %s4351_s18  ;;  %p4359_p4 = scmp.lt.u32.totalorder %s4351_s18, %s5156_s19 }
 0xdac   : > { %p4353_p12 = pnand %p4352_p11, %p4600_p3 }
 0xdad   : > { %p4358_p2 = por %p4357_p1, %p4356_p0 }
 0xdae   : > { %p4354_p13 = pneg %p4353_p12 }
 0xdaf   : > { %p4360_p5 = por %p4359_p4, %p4358_p2 }
 0xdb1   : > { %p4361_p6 = pnand %p4360_p5, %p4354_p13 }
 0xdb3   : > { %4364 = shalt.err (!%p4361_p6)
}
 0xdb4   : > { %4068 = dma.vmem_to_hbm [thread:$0]  (%p4600_p3), %s3458_s8, 16, %s5156_s19, %s3445_s0  }
 0xdb5 PF: > { %s5296_s30 = sld [smem:[#allocation12_spill]]  ;;  %s5297_s4 = sld [smem:[#allocation6_spill]] }
 0xdbb   : > { %p4074_p7 = scmp.ge.s32.totalorder %s5296_s30, 2  ;;  %s3469_s2 = sand.u32 1, %s5297_s4  }
 0xdbc   : > { %s3470_s26 = scalar_lea.sflag [#allocation4], %s3469_s2 }
 0xdbd   : > { %p4071_p8 = pnand %p4074_p7, %p4610_p9 }
 0xdbf   : > { %4398 = dma.done.wait (!%p4071_p8), %s3470_s26, 16  }
 0xdc0   : > { %4400 = vsyncadd (!%p4071_p8), %s3470_s26, 4294967280  ;;  %s33_s26 = sadd.s32 1, %s5296_s30   ;;  %s5299_s29 = sld [smem:[#allocation7_spill]] }
 0xdc1   : > { %p30_p10 = scmp.ge.s32.totalorder %s33_s26, 6   ;;  %s5300_s23 = sld [smem:[#allocation17_spill]] }
 0xdc2   : > { %s5301_s24 = sld [smem:[#allocation10_spill]]  ;;  %s5302_s2 = sld [smem:[#allocation11_spill]] }
 0xdc3   : > { %s5303_s25 = sld [smem:[#allocation13_spill]]  ;;  %s5304_s3 = sld [smem:[#allocation15_spill]] }
 0xdc4   : > { %s5305_s1 = smov %s4407_s22  ;;  %32 = sbr.rel (!%p30_p10) target bundleno = 19 (0x13), region = 179 }
 0xdc6   : > { %s5306_s22 = smov %s5299_s29 }
 0xdcb   :  { %3474 = vsyncpa [#allocation4], 1 }
 0xdcc   :  { %3476 = vsyncpa [#allocation4 + $0x1], 1 }

</bundles_post_ra>
